<compile_context>
chip_gen: v7x
topology: tpu7x:2x2x1
jax: 0.10.0
libtpu: 0.0.40
codegen_flags: <defaults>
</compile_context>

<pallas_src>
import functools

import jax
import jax.numpy as jnp
from jax import lax
from jax.experimental import pallas as pl
from jax.experimental.pallas import tpu as pltpu


def _round_up(x, m):
    return ((x + m - 1) // m) * m


def _sigmoid_1push(x):
    # sigmoid(x) == 0.5 * tanh(0.5 * x) + 0.5: a single EUP transcendental
    # (tanh) plus cheap VPU mul/add, instead of exp + add + reciprocal.
    return 0.5 * jnp.tanh(0.5 * x) + 0.5


def _lstm_kernel(x_ref, wx_ref, b_ref, wh_hbm, wf_hbm, bf_hbm,   # inputs
                 out_ref,                                        # output
                 xw_ref, wh_ref, wf_ref, bf_ref, sem,            # scratch
                 *, T):
    Bp = out_ref.shape[0]          # padded batch (sublane-aligned)
    Hp = wh_ref.shape[0]           # padded hidden (lane-aligned, 128)

    # Kick off the weight DMAs immediately.  Wh overlaps the (recurrence-free)
    # input projection below; W_fc / b_fc overlap the whole recurrence and are
    # only waited on right before the final fc matmul.
    wh_cp = pltpu.make_async_copy(wh_hbm, wh_ref, sem.at[0])
    wf_cp = pltpu.make_async_copy(wf_hbm, wf_ref, sem.at[1])
    bf_cp = pltpu.make_async_copy(bf_hbm, bf_ref, sem.at[2])
    wh_cp.start()
    wf_cp.start()
    bf_cp.start()

    # Hoisted input projection + bias for ALL timesteps (no recurrence dep):
    # (T*Bp, Ip) @ (Ip, 4Hp) + (1, 4Hp), done once into VMEM scratch.
    xw_ref[...] = (jnp.dot(x_ref[...], wx_ref[...],
                           preferred_element_type=jnp.float32)
                   + b_ref[...])

    h = jnp.zeros((Bp, Hp), jnp.float32)
    c = jnp.zeros((Bp, Hp), jnp.float32)

    wh_cp.wait()

    # TODO(synk): if the bundle dump shows a per-step MXU RHS push, drive the
    # MXU explicitly (pltpu.matmul_push_rhs once + matmul_acc_lhs per step) to
    # keep Wh staged across all T iterations.
    for t in range(T):
        # Single-pass bf16 recurrent matmul (f32 accumulation): the only op on
        # the serial critical path.
        gates = (xw_ref[pl.ds(t * Bp, Bp), :]
                 + jnp.dot(h.astype(jnp.bfloat16), wh_ref[...],
                           preferred_element_type=jnp.float32))
        # Gate columns were pre-permuted to [i, f, o, g]: one contiguous
        # sigmoid slab + one tanh slab, each gate a lane-aligned 128-wide tile.
        sig = _sigmoid_1push(gates[:, 0:3 * Hp])
        i_g = sig[:, 0 * Hp:1 * Hp]
        f_g = sig[:, 1 * Hp:2 * Hp]
        o_g = sig[:, 2 * Hp:3 * Hp]
        g_g = jnp.tanh(gates[:, 3 * Hp:4 * Hp])
        c = f_g * c + i_g * g_g
        h = o_g * jnp.tanh(c)

    # fc on the last hidden state, written as one lane-dense (Bp, Op) slab.
    wf_cp.wait()
    bf_cp.wait()
    out_ref[...] = (jnp.dot(h, wf_ref[...], preferred_element_type=jnp.float32)
                    + bf_ref[...])


def prepare_lstm_weights(w_ih, w_hh, b_ih, b_hh, w_fc, b_fc):
    """One-time (model-load) weight prep: transpose, reorder PyTorch gate
    blocks [i, f, g, o] -> [i, f, o, g], pad gates to 128 lanes, Wh -> bf16."""
    f32 = jnp.float32
    H = w_hh.shape[1]              # w_hh: (4H, H)
    I = w_ih.shape[1]              # w_ih: (4H, I)
    O = w_fc.shape[0]              # w_fc: (O, H)
    Ip = _round_up(I, 8)
    Hp = _round_up(H, 128)
    Op = _round_up(O, 128)
    perm = [0, 1, 3, 2]            # [i, f, g, o] -> [i, f, o, g]

    def prep_gate_cols(w):
        # (rows, 4H) -> reorder gate blocks -> pad each gate to Hp lanes.
        r = w.shape[0]
        w4 = w.reshape(r, 4, H)[:, perm, :]
        return jnp.pad(w4, ((0, 0), (0, 0), (0, Hp - H))).reshape(r, 4 * Hp)

    wx = prep_gate_cols(jnp.transpose(w_ih).astype(f32))               # (I, 4Hp)
    wx = jnp.pad(wx, ((0, Ip - I), (0, 0)))                            # (Ip, 4Hp)
    wh = prep_gate_cols(jnp.transpose(w_hh).astype(f32))               # (H, 4Hp)
    wh = jnp.pad(wh, ((0, Hp - H), (0, 0))).astype(jnp.bfloat16)       # (Hp, 4Hp)
    b = prep_gate_cols((b_ih + b_hh).astype(f32).reshape(1, 4 * H))    # (1, 4Hp)
    wf = jnp.pad(jnp.transpose(w_fc).astype(f32),
                 ((0, Hp - H), (0, Op - O)))                           # (Hp, Op)
    bf = jnp.pad(b_fc.astype(f32).reshape(1, O), ((0, 0), (0, Op - O)))  # (1, Op)
    return wx, wh, b, wf, bf


@functools.partial(jax.jit, static_argnames=("out_size",))
def lstm_classifier_pallas(x_btI, wx, wh, b, wf, bf, *, out_size):
    """x_btI: (B, T, I) float32 (PyTorch batch_first). Returns (B, out_size)."""
    B, T, I = x_btI.shape
    Ip = wx.shape[0]
    Hp = wh.shape[0]
    Op = wf.shape[1]
    f32 = jnp.float32
    Bp = _round_up(B, 8)            # sublane-align batch

    # x: (B,T,I) -> (T, Bp, Ip) -> (T*Bp, Ip); padded rows/cols are zeros.
    x = jnp.transpose(x_btI.astype(f32), (1, 0, 2))
    x = jnp.pad(x, ((0, 0), (0, Bp - B), (0, Ip - I))).reshape(T * Bp, Ip)

    # TODO(synk): on v7x with large batch, add a leading "parallel" batch grid
    # axis so both TensorCores split the batch; at B=2 there is nothing to shard.
    out_padded = pl.pallas_call(
        functools.partial(_lstm_kernel, T=T),
        out_shape=jax.ShapeDtypeStruct((Bp, Op), f32),
        in_specs=[
            pl.BlockSpec(memory_space=pltpu.MemorySpace.VMEM),   # x (flattened)
            pl.BlockSpec(memory_space=pltpu.MemorySpace.VMEM),   # Wx
            pl.BlockSpec(memory_space=pltpu.MemorySpace.VMEM),   # bias (b_ih+b_hh)
            pl.BlockSpec(memory_space=pl.ANY),                   # Wh   (manual DMA)
            pl.BlockSpec(memory_space=pl.ANY),                   # W_fc (manual DMA)
            pl.BlockSpec(memory_space=pl.ANY),                   # b_fc (manual DMA)
        ],
        out_specs=pl.BlockSpec(memory_space=pltpu.MemorySpace.VMEM),
        scratch_shapes=[
            pltpu.VMEM((T * Bp, 4 * Hp), f32),          # x@Wx + b, all steps
            pltpu.VMEM((Hp, 4 * Hp), jnp.bfloat16),     # Wh landing buffer
            pltpu.VMEM((Hp, Op), f32),                  # W_fc landing buffer
            pltpu.VMEM((1, Op), f32),                   # b_fc landing buffer
            pltpu.SemaphoreType.DMA((3,)),
        ],
    )(x, wx, b, wh, wf, bf)

    return out_padded[:B, :out_size]


def lstm_classifier_ref(x_btI, w_ih, w_hh, b_ih, b_hh, w_fc, b_fc):
    """Plain-JAX f32 reference (PyTorch LSTM semantics, gate order i,f,g,o)."""
    B, T, I = x_btI.shape
    H = w_hh.shape[1]
    h = jnp.zeros((B, H), jnp.float32)
    c = jnp.zeros((B, H), jnp.float32)

    def step(carry, x_t):
        h, c = carry
        gates = x_t @ w_ih.T + b_ih + h @ w_hh.T + b_hh
        i = jax.nn.sigmoid(gates[:, 0 * H:1 * H])
        f = jax.nn.sigmoid(gates[:, 1 * H:2 * H])
        g = jnp.tanh(gates[:, 2 * H:3 * H])
        o = jax.nn.sigmoid(gates[:, 3 * H:4 * H])
        c = f * c + i * g
        h = o * jnp.tanh(c)
        return (h, c), None

    (h, c), _ = lax.scan(step, (h, c), jnp.transpose(x_btI, (1, 0, 2)))
    return h @ w_fc.T + b_fc


if __name__ == "__main__":
    B, T, I, H, O = 2, 8, 5, 50, 2

    key = jax.random.PRNGKey(0)
    ks = jax.random.split(key, 7)
    scale = 1.0 / jnp.sqrt(H)
    w_ih = jax.random.uniform(ks[0], (4 * H, I), jnp.float32, -scale, scale)
    w_hh = jax.random.uniform(ks[1], (4 * H, H), jnp.float32, -scale, scale)
    b_ih = jax.random.uniform(ks[2], (4 * H,), jnp.float32, -scale, scale)
    b_hh = jax.random.uniform(ks[3], (4 * H,), jnp.float32, -scale, scale)
    w_fc = jax.random.uniform(ks[4], (O, H), jnp.float32, -scale, scale)
    b_fc = jax.random.uniform(ks[5], (O,), jnp.float32, -scale, scale)
    x = jax.random.normal(ks[6], (B, T, I), jnp.float32)

    # One-time weight prep (model load); per-call path only touches x.
    wx, wh, b, wf, bf = prepare_lstm_weights(w_ih, w_hh, b_ih, b_hh, w_fc, b_fc)

    out = lstm_classifier_pallas(x, wx, wh, b, wf, bf, out_size=O)
    out = jax.block_until_ready(out)

    ref = lstm_classifier_ref(x, w_ih, w_hh, b_ih, b_hh, w_fc, b_fc)
    assert out.shape == (B, O)
    # bf16 recurrent matmul -> looser tolerance vs the f32 reference.
    assert jnp.allclose(out, ref, atol=2e-2, rtol=2e-2), (out, ref)

    print("KERNEL_OK")
</pallas_src>

<mosaic_0001>
module attributes {stable_mosaic.version = 11 : i64} {
  func.func @_lstm_kernel(%arg0: memref<64x8xf32, #tpu.memory_space<vmem>>, %arg1: memref<8x512xf32, #tpu.memory_space<vmem>>, %arg2: memref<1x512xf32, #tpu.memory_space<vmem>>, %arg3: memref<128x512xbf16, #tpu.memory_space<any>>, %arg4: memref<128x128xf32, #tpu.memory_space<any>>, %arg5: memref<1x128xf32, #tpu.memory_space<any>>, %arg6: memref<8x128xf32, #tpu.memory_space<vmem>>, %arg7: memref<64x512xf32, #tpu.memory_space<vmem>>, %arg8: memref<128x512xbf16, #tpu.memory_space<vmem>>, %arg9: memref<128x128xf32, #tpu.memory_space<vmem>>, %arg10: memref<1x128xf32, #tpu.memory_space<vmem>>, %arg11: memref<3x!tpu.dma_semaphore, #tpu.memory_space<semaphore_mem>>) attributes {dimension_semantics = [], scalar_prefetch = 0 : i64, scratch_operands = 5 : i64, tpu.core_type = #tpu.core_type<tc>} {
    %c0_i32 = arith.constant 0 : i32
    %0 = tpu.memref_slice %arg11[%c0_i32] : memref<3x!tpu.dma_semaphore, #tpu.memory_space<semaphore_mem>> -> memref<1x!tpu.dma_semaphore, #tpu.memory_space<semaphore_mem>>
    %1 = tpu.memref_squeeze %0 : memref<1x!tpu.dma_semaphore, #tpu.memory_space<semaphore_mem>> -> memref<!tpu.dma_semaphore, #tpu.memory_space<semaphore_mem>>
    tpu.enqueue_dma source(%arg3 : memref<128x512xbf16, #tpu.memory_space<any>>) target(%arg8 : memref<128x512xbf16, #tpu.memory_space<vmem>>) target_semaphore(%1 : memref<!tpu.dma_semaphore, #tpu.memory_space<semaphore_mem>>)
    %c1_i32 = arith.constant 1 : i32
    %2 = tpu.memref_slice %arg11[%c1_i32] : memref<3x!tpu.dma_semaphore, #tpu.memory_space<semaphore_mem>> -> memref<1x!tpu.dma_semaphore, #tpu.memory_space<semaphore_mem>>
    %3 = tpu.memref_squeeze %2 : memref<1x!tpu.dma_semaphore, #tpu.memory_space<semaphore_mem>> -> memref<!tpu.dma_semaphore, #tpu.memory_space<semaphore_mem>>
    tpu.enqueue_dma source(%arg4 : memref<128x128xf32, #tpu.memory_space<any>>) target(%arg9 : memref<128x128xf32, #tpu.memory_space<vmem>>) target_semaphore(%3 : memref<!tpu.dma_semaphore, #tpu.memory_space<semaphore_mem>>)
    %c2_i32 = arith.constant 2 : i32
    %4 = tpu.memref_slice %arg11[%c2_i32] : memref<3x!tpu.dma_semaphore, #tpu.memory_space<semaphore_mem>> -> memref<1x!tpu.dma_semaphore, #tpu.memory_space<semaphore_mem>>
    %5 = tpu.memref_squeeze %4 : memref<1x!tpu.dma_semaphore, #tpu.memory_space<semaphore_mem>> -> memref<!tpu.dma_semaphore, #tpu.memory_space<semaphore_mem>>
    tpu.enqueue_dma source(%arg5 : memref<1x128xf32, #tpu.memory_space<any>>) target(%arg10 : memref<1x128xf32, #tpu.memory_space<vmem>>) target_semaphore(%5 : memref<!tpu.dma_semaphore, #tpu.memory_space<semaphore_mem>>)
    %c0 = arith.constant 0 : index
    %c0_0 = arith.constant 0 : index
    %6 = vector.load %arg0[%c0, %c0_0] : memref<64x8xf32, #tpu.memory_space<vmem>>, vector<64x8xf32>
    %c0_1 = arith.constant 0 : index
    %c0_2 = arith.constant 0 : index
    %7 = vector.load %arg1[%c0_1, %c0_2] : memref<8x512xf32, #tpu.memory_space<vmem>>, vector<8x512xf32>
    %cst = arith.constant dense<0.000000e+00> : vector<64x512xf32>
    %8 = tpu.matmul %6, %7, %cst {dimension_numbers = #tpu.dot_dimension_numbers<[1], [0], [0], [1], [0, 0, 1, 1], [], []>} : vector<64x8xf32>, vector<8x512xf32>, vector<64x512xf32> -> vector<64x512xf32>
    %c0_3 = arith.constant 0 : index
    %c0_4 = arith.constant 0 : index
    %9 = vector.load %arg2[%c0_3, %c0_4] : memref<1x512xf32, #tpu.memory_space<vmem>>, vector<1x512xf32>
    %10 = vector.broadcast %9 : vector<1x512xf32> to vector<64x512xf32>
    %11 = arith.addf %8, %10 : vector<64x512xf32>
    %c0_5 = arith.constant 0 : index
    %c0_6 = arith.constant 0 : index
    %12 = vector.load %arg7[%c0_5, %c0_6] : memref<64x512xf32, #tpu.memory_space<vmem>>, vector<64x512xf32>
    tpu.vector_store %arg7[%c0_5, %c0_6], %11 {strides = array<i32>} : memref<64x512xf32, #tpu.memory_space<vmem>>, vector<64x512xf32>,
    %cst_7 = arith.constant 0.000000e+00 : f32
    %13 = vector.broadcast %cst_7 : f32 to vector<8x128xf32>
    %cst_8 = arith.constant 0.000000e+00 : f32
    %14 = vector.broadcast %cst_8 : f32 to vector<8x128xf32>
    %c0_i32_9 = arith.constant 0 : i32
    %15 = tpu.memref_slice %arg11[%c0_i32_9] : memref<3x!tpu.dma_semaphore, #tpu.memory_space<semaphore_mem>> -> memref<1x!tpu.dma_semaphore, #tpu.memory_space<semaphore_mem>>
    %16 = tpu.memref_squeeze %15 : memref<1x!tpu.dma_semaphore, #tpu.memory_space<semaphore_mem>> -> memref<!tpu.dma_semaphore, #tpu.memory_space<semaphore_mem>>
    tpu.wait_dma2 semaphore(%16 : memref<!tpu.dma_semaphore, #tpu.memory_space<semaphore_mem>>) src(%arg3 : memref<128x512xbf16, #tpu.memory_space<any>>) dst(%arg8 : memref<128x512xbf16, #tpu.memory_space<vmem>>)
    %c0_10 = arith.constant 0 : index
    %c0_11 = arith.constant 0 : index
    %17 = vector.load %arg7[%c0_10, %c0_11] : memref<64x512xf32, #tpu.memory_space<vmem>>, vector<8x512xf32>
    %18 = arith.truncf %13 : vector<8x128xf32> to vector<8x128xbf16>
    %c0_12 = arith.constant 0 : index
    %c0_13 = arith.constant 0 : index
    %19 = vector.load %arg8[%c0_12, %c0_13] : memref<128x512xbf16, #tpu.memory_space<vmem>>, vector<128x512xbf16>
    %cst_14 = arith.constant dense<0.000000e+00> : vector<8x512xf32>
    %20 = tpu.matmul %18, %19, %cst_14 {dimension_numbers = #tpu.dot_dimension_numbers<[1], [0], [0], [1], [0, 0, 1, 1], [], []>} : vector<8x128xbf16>, vector<128x512xbf16>, vector<8x512xf32> -> vector<8x512xf32>
    %21 = arith.addf %17, %20 : vector<8x512xf32>
    %22 = vector.extract_strided_slice %21 {offsets = [0, 0], sizes = [8, 384], strides = [1, 1]} : vector<8x512xf32> to vector<8x384xf32>
    %cst_15 = arith.constant 5.000000e-01 : f32
    %23 = vector.broadcast %cst_15 : f32 to vector<8x384xf32>
    %24 = arith.mulf %23, %22 : vector<8x384xf32>
    %25 = math.tanh %24 : vector<8x384xf32>
    %cst_16 = arith.constant 5.000000e-01 : f32
    %26 = vector.broadcast %cst_16 : f32 to vector<8x384xf32>
    %27 = arith.mulf %26, %25 : vector<8x384xf32>
    %cst_17 = arith.constant 5.000000e-01 : f32
    %28 = vector.broadcast %cst_17 : f32 to vector<8x384xf32>
    %29 = arith.addf %27, %28 : vector<8x384xf32>
    %30 = vector.extract_strided_slice %29 {offsets = [0, 0], sizes = [8, 128], strides = [1, 1]} : vector<8x384xf32> to vector<8x128xf32>
    %31 = vector.extract_strided_slice %29 {offsets = [0, 128], sizes = [8, 128], strides = [1, 1]} : vector<8x384xf32> to vector<8x128xf32>
    %32 = vector.extract_strided_slice %29 {offsets = [0, 256], sizes = [8, 128], strides = [1, 1]} : vector<8x384xf32> to vector<8x128xf32>
    %33 = vector.extract_strided_slice %21 {offsets = [0, 384], sizes = [8, 128], strides = [1, 1]} : vector<8x512xf32> to vector<8x128xf32>
    %34 = math.tanh %33 : vector<8x128xf32>
    %35 = arith.mulf %31, %14 : vector<8x128xf32>
    %36 = arith.mulf %30, %34 : vector<8x128xf32>
    %37 = arith.addf %35, %36 : vector<8x128xf32>
    %38 = math.tanh %37 : vector<8x128xf32>
    %39 = arith.mulf %32, %38 : vector<8x128xf32>
    %c8 = arith.constant 8 : index
    %c0_18 = arith.constant 0 : index
    %40 = vector.load %arg7[%c8, %c0_18] : memref<64x512xf32, #tpu.memory_space<vmem>>, vector<8x512xf32>
    %41 = arith.truncf %39 : vector<8x128xf32> to vector<8x128xbf16>
    %c0_19 = arith.constant 0 : index
    %c0_20 = arith.constant 0 : index
    %42 = vector.load %arg8[%c0_19, %c0_20] : memref<128x512xbf16, #tpu.memory_space<vmem>>, vector<128x512xbf16>
    %cst_21 = arith.constant dense<0.000000e+00> : vector<8x512xf32>
    %43 = tpu.matmul %41, %42, %cst_21 {dimension_numbers = #tpu.dot_dimension_numbers<[1], [0], [0], [1], [0, 0, 1, 1], [], []>} : vector<8x128xbf16>, vector<128x512xbf16>, vector<8x512xf32> -> vector<8x512xf32>
    %44 = arith.addf %40, %43 : vector<8x512xf32>
    %45 = vector.extract_strided_slice %44 {offsets = [0, 0], sizes = [8, 384], strides = [1, 1]} : vector<8x512xf32> to vector<8x384xf32>
    %cst_22 = arith.constant 5.000000e-01 : f32
    %46 = vector.broadcast %cst_22 : f32 to vector<8x384xf32>
    %47 = arith.mulf %46, %45 : vector<8x384xf32>
    %48 = math.tanh %47 : vector<8x384xf32>
    %cst_23 = arith.constant 5.000000e-01 : f32
    %49 = vector.broadcast %cst_23 : f32 to vector<8x384xf32>
    %50 = arith.mulf %49, %48 : vector<8x384xf32>
    %cst_24 = arith.constant 5.000000e-01 : f32
    %51 = vector.broadcast %cst_24 : f32 to vector<8x384xf32>
    %52 = arith.addf %50, %51 : vector<8x384xf32>
    %53 = vector.extract_strided_slice %52 {offsets = [0, 0], sizes = [8, 128], strides = [1, 1]} : vector<8x384xf32> to vector<8x128xf32>
    %54 = vector.extract_strided_slice %52 {offsets = [0, 128], sizes = [8, 128], strides = [1, 1]} : vector<8x384xf32> to vector<8x128xf32>
    %55 = vector.extract_strided_slice %52 {offsets = [0, 256], sizes = [8, 128], strides = [1, 1]} : vector<8x384xf32> to vector<8x128xf32>
    %56 = vector.extract_strided_slice %44 {offsets = [0, 384], sizes = [8, 128], strides = [1, 1]} : vector<8x512xf32> to vector<8x128xf32>
    %57 = math.tanh %56 : vector<8x128xf32>
    %58 = arith.mulf %54, %37 : vector<8x128xf32>
    %59 = arith.mulf %53, %57 : vector<8x128xf32>
    %60 = arith.addf %58, %59 : vector<8x128xf32>
    %61 = math.tanh %60 : vector<8x128xf32>
    %62 = arith.mulf %55, %61 : vector<8x128xf32>
    %c16 = arith.constant 16 : index
    %c0_25 = arith.constant 0 : index
    %63 = vector.load %arg7[%c16, %c0_25] : memref<64x512xf32, #tpu.memory_space<vmem>>, vector<8x512xf32>
    %64 = arith.truncf %62 : vector<8x128xf32> to vector<8x128xbf16>
    %c0_26 = arith.constant 0 : index
    %c0_27 = arith.constant 0 : index
    %65 = vector.load %arg8[%c0_26, %c0_27] : memref<128x512xbf16, #tpu.memory_space<vmem>>, vector<128x512xbf16>
    %cst_28 = arith.constant dense<0.000000e+00> : vector<8x512xf32>
    %66 = tpu.matmul %64, %65, %cst_28 {dimension_numbers = #tpu.dot_dimension_numbers<[1], [0], [0], [1], [0, 0, 1, 1], [], []>} : vector<8x128xbf16>, vector<128x512xbf16>, vector<8x512xf32> -> vector<8x512xf32>
    %67 = arith.addf %63, %66 : vector<8x512xf32>
    %68 = vector.extract_strided_slice %67 {offsets = [0, 0], sizes = [8, 384], strides = [1, 1]} : vector<8x512xf32> to vector<8x384xf32>
    %cst_29 = arith.constant 5.000000e-01 : f32
    %69 = vector.broadcast %cst_29 : f32 to vector<8x384xf32>
    %70 = arith.mulf %69, %68 : vector<8x384xf32>
    %71 = math.tanh %70 : vector<8x384xf32>
    %cst_30 = arith.constant 5.000000e-01 : f32
    %72 = vector.broadcast %cst_30 : f32 to vector<8x384xf32>
    %73 = arith.mulf %72, %71 : vector<8x384xf32>
    %cst_31 = arith.constant 5.000000e-01 : f32
    %74 = vector.broadcast %cst_31 : f32 to vector<8x384xf32>
    %75 = arith.addf %73, %74 : vector<8x384xf32>
    %76 = vector.extract_strided_slice %75 {offsets = [0, 0], sizes = [8, 128], strides = [1, 1]} : vector<8x384xf32> to vector<8x128xf32>
    %77 = vector.extract_strided_slice %75 {offsets = [0, 128], sizes = [8, 128], strides = [1, 1]} : vector<8x384xf32> to vector<8x128xf32>
    %78 = vector.extract_strided_slice %75 {offsets = [0, 256], sizes = [8, 128], strides = [1, 1]} : vector<8x384xf32> to vector<8x128xf32>
    %79 = vector.extract_strided_slice %67 {offsets = [0, 384], sizes = [8, 128], strides = [1, 1]} : vector<8x512xf32> to vector<8x128xf32>
    %80 = math.tanh %79 : vector<8x128xf32>
    %81 = arith.mulf %77, %60 : vector<8x128xf32>
    %82 = arith.mulf %76, %80 : vector<8x128xf32>
    %83 = arith.addf %81, %82 : vector<8x128xf32>
    %84 = math.tanh %83 : vector<8x128xf32>
    %85 = arith.mulf %78, %84 : vector<8x128xf32>
    %c24 = arith.constant 24 : index
    %c0_32 = arith.constant 0 : index
    %86 = vector.load %arg7[%c24, %c0_32] : memref<64x512xf32, #tpu.memory_space<vmem>>, vector<8x512xf32>
    %87 = arith.truncf %85 : vector<8x128xf32> to vector<8x128xbf16>
    %c0_33 = arith.constant 0 : index
    %c0_34 = arith.constant 0 : index
    %88 = vector.load %arg8[%c0_33, %c0_34] : memref<128x512xbf16, #tpu.memory_space<vmem>>, vector<128x512xbf16>
    %cst_35 = arith.constant dense<0.000000e+00> : vector<8x512xf32>
    %89 = tpu.matmul %87, %88, %cst_35 {dimension_numbers = #tpu.dot_dimension_numbers<[1], [0], [0], [1], [0, 0, 1, 1], [], []>} : vector<8x128xbf16>, vector<128x512xbf16>, vector<8x512xf32> -> vector<8x512xf32>
    %90 = arith.addf %86, %89 : vector<8x512xf32>
    %91 = vector.extract_strided_slice %90 {offsets = [0, 0], sizes = [8, 384], strides = [1, 1]} : vector<8x512xf32> to vector<8x384xf32>
    %cst_36 = arith.constant 5.000000e-01 : f32
    %92 = vector.broadcast %cst_36 : f32 to vector<8x384xf32>
    %93 = arith.mulf %92, %91 : vector<8x384xf32>
    %94 = math.tanh %93 : vector<8x384xf32>
    %cst_37 = arith.constant 5.000000e-01 : f32
    %95 = vector.broadcast %cst_37 : f32 to vector<8x384xf32>
    %96 = arith.mulf %95, %94 : vector<8x384xf32>
    %cst_38 = arith.constant 5.000000e-01 : f32
    %97 = vector.broadcast %cst_38 : f32 to vector<8x384xf32>
    %98 = arith.addf %96, %97 : vector<8x384xf32>
    %99 = vector.extract_strided_slice %98 {offsets = [0, 0], sizes = [8, 128], strides = [1, 1]} : vector<8x384xf32> to vector<8x128xf32>
    %100 = vector.extract_strided_slice %98 {offsets = [0, 128], sizes = [8, 128], strides = [1, 1]} : vector<8x384xf32> to vector<8x128xf32>
    %101 = vector.extract_strided_slice %98 {offsets = [0, 256], sizes = [8, 128], strides = [1, 1]} : vector<8x384xf32> to vector<8x128xf32>
    %102 = vector.extract_strided_slice %90 {offsets = [0, 384], sizes = [8, 128], strides = [1, 1]} : vector<8x512xf32> to vector<8x128xf32>
    %103 = math.tanh %102 : vector<8x128xf32>
    %104 = arith.mulf %100, %83 : vector<8x128xf32>
    %105 = arith.mulf %99, %103 : vector<8x128xf32>
    %106 = arith.addf %104, %105 : vector<8x128xf32>
    %107 = math.tanh %106 : vector<8x128xf32>
    %108 = arith.mulf %101, %107 : vector<8x128xf32>
    %c32 = arith.constant 32 : index
    %c0_39 = arith.constant 0 : index
    %109 = vector.load %arg7[%c32, %c0_39] : memref<64x512xf32, #tpu.memory_space<vmem>>, vector<8x512xf32>
    %110 = arith.truncf %108 : vector<8x128xf32> to vector<8x128xbf16>
    %c0_40 = arith.constant 0 : index
    %c0_41 = arith.constant 0 : index
    %111 = vector.load %arg8[%c0_40, %c0_41] : memref<128x512xbf16, #tpu.memory_space<vmem>>, vector<128x512xbf16>
    %cst_42 = arith.constant dense<0.000000e+00> : vector<8x512xf32>
    %112 = tpu.matmul %110, %111, %cst_42 {dimension_numbers = #tpu.dot_dimension_numbers<[1], [0], [0], [1], [0, 0, 1, 1], [], []>} : vector<8x128xbf16>, vector<128x512xbf16>, vector<8x512xf32> -> vector<8x512xf32>
    %113 = arith.addf %109, %112 : vector<8x512xf32>
    %114 = vector.extract_strided_slice %113 {offsets = [0, 0], sizes = [8, 384], strides = [1, 1]} : vector<8x512xf32> to vector<8x384xf32>
    %cst_43 = arith.constant 5.000000e-01 : f32
    %115 = vector.broadcast %cst_43 : f32 to vector<8x384xf32>
    %116 = arith.mulf %115, %114 : vector<8x384xf32>
    %117 = math.tanh %116 : vector<8x384xf32>
    %cst_44 = arith.constant 5.000000e-01 : f32
    %118 = vector.broadcast %cst_44 : f32 to vector<8x384xf32>
    %119 = arith.mulf %118, %117 : vector<8x384xf32>
    %cst_45 = arith.constant 5.000000e-01 : f32
    %120 = vector.broadcast %cst_45 : f32 to vector<8x384xf32>
    %121 = arith.addf %119, %120 : vector<8x384xf32>
    %122 = vector.extract_strided_slice %121 {offsets = [0, 0], sizes = [8, 128], strides = [1, 1]} : vector<8x384xf32> to vector<8x128xf32>
    %123 = vector.extract_strided_slice %121 {offsets = [0, 128], sizes = [8, 128], strides = [1, 1]} : vector<8x384xf32> to vector<8x128xf32>
    %124 = vector.extract_strided_slice %121 {offsets = [0, 256], sizes = [8, 128], strides = [1, 1]} : vector<8x384xf32> to vector<8x128xf32>
    %125 = vector.extract_strided_slice %113 {offsets = [0, 384], sizes = [8, 128], strides = [1, 1]} : vector<8x512xf32> to vector<8x128xf32>
    %126 = math.tanh %125 : vector<8x128xf32>
    %127 = arith.mulf %123, %106 : vector<8x128xf32>
    %128 = arith.mulf %122, %126 : vector<8x128xf32>
    %129 = arith.addf %127, %128 : vector<8x128xf32>
    %130 = math.tanh %129 : vector<8x128xf32>
    %131 = arith.mulf %124, %130 : vector<8x128xf32>
    %c40 = arith.constant 40 : index
    %c0_46 = arith.constant 0 : index
    %132 = vector.load %arg7[%c40, %c0_46] : memref<64x512xf32, #tpu.memory_space<vmem>>, vector<8x512xf32>
    %133 = arith.truncf %131 : vector<8x128xf32> to vector<8x128xbf16>
    %c0_47 = arith.constant 0 : index
    %c0_48 = arith.constant 0 : index
    %134 = vector.load %arg8[%c0_47, %c0_48] : memref<128x512xbf16, #tpu.memory_space<vmem>>, vector<128x512xbf16>
    %cst_49 = arith.constant dense<0.000000e+00> : vector<8x512xf32>
    %135 = tpu.matmul %133, %134, %cst_49 {dimension_numbers = #tpu.dot_dimension_numbers<[1], [0], [0], [1], [0, 0, 1, 1], [], []>} : vector<8x128xbf16>, vector<128x512xbf16>, vector<8x512xf32> -> vector<8x512xf32>
    %136 = arith.addf %132, %135 : vector<8x512xf32>
    %137 = vector.extract_strided_slice %136 {offsets = [0, 0], sizes = [8, 384], strides = [1, 1]} : vector<8x512xf32> to vector<8x384xf32>
    %cst_50 = arith.constant 5.000000e-01 : f32
    %138 = vector.broadcast %cst_50 : f32 to vector<8x384xf32>
    %139 = arith.mulf %138, %137 : vector<8x384xf32>
    %140 = math.tanh %139 : vector<8x384xf32>
    %cst_51 = arith.constant 5.000000e-01 : f32
    %141 = vector.broadcast %cst_51 : f32 to vector<8x384xf32>
    %142 = arith.mulf %141, %140 : vector<8x384xf32>
    %cst_52 = arith.constant 5.000000e-01 : f32
    %143 = vector.broadcast %cst_52 : f32 to vector<8x384xf32>
    %144 = arith.addf %142, %143 : vector<8x384xf32>
    %145 = vector.extract_strided_slice %144 {offsets = [0, 0], sizes = [8, 128], strides = [1, 1]} : vector<8x384xf32> to vector<8x128xf32>
    %146 = vector.extract_strided_slice %144 {offsets = [0, 128], sizes = [8, 128], strides = [1, 1]} : vector<8x384xf32> to vector<8x128xf32>
    %147 = vector.extract_strided_slice %144 {offsets = [0, 256], sizes = [8, 128], strides = [1, 1]} : vector<8x384xf32> to vector<8x128xf32>
    %148 = vector.extract_strided_slice %136 {offsets = [0, 384], sizes = [8, 128], strides = [1, 1]} : vector<8x512xf32> to vector<8x128xf32>
    %149 = math.tanh %148 : vector<8x128xf32>
    %150 = arith.mulf %146, %129 : vector<8x128xf32>
    %151 = arith.mulf %145, %149 : vector<8x128xf32>
    %152 = arith.addf %150, %151 : vector<8x128xf32>
    %153 = math.tanh %152 : vector<8x128xf32>
    %154 = arith.mulf %147, %153 : vector<8x128xf32>
    %c48 = arith.constant 48 : index
    %c0_53 = arith.constant 0 : index
    %155 = vector.load %arg7[%c48, %c0_53] : memref<64x512xf32, #tpu.memory_space<vmem>>, vector<8x512xf32>
    %156 = arith.truncf %154 : vector<8x128xf32> to vector<8x128xbf16>
    %c0_54 = arith.constant 0 : index
    %c0_55 = arith.constant 0 : index
    %157 = vector.load %arg8[%c0_54, %c0_55] : memref<128x512xbf16, #tpu.memory_space<vmem>>, vector<128x512xbf16>
    %cst_56 = arith.constant dense<0.000000e+00> : vector<8x512xf32>
    %158 = tpu.matmul %156, %157, %cst_56 {dimension_numbers = #tpu.dot_dimension_numbers<[1], [0], [0], [1], [0, 0, 1, 1], [], []>} : vector<8x128xbf16>, vector<128x512xbf16>, vector<8x512xf32> -> vector<8x512xf32>
    %159 = arith.addf %155, %158 : vector<8x512xf32>
    %160 = vector.extract_strided_slice %159 {offsets = [0, 0], sizes = [8, 384], strides = [1, 1]} : vector<8x512xf32> to vector<8x384xf32>
    %cst_57 = arith.constant 5.000000e-01 : f32
    %161 = vector.broadcast %cst_57 : f32 to vector<8x384xf32>
    %162 = arith.mulf %161, %160 : vector<8x384xf32>
    %163 = math.tanh %162 : vector<8x384xf32>
    %cst_58 = arith.constant 5.000000e-01 : f32
    %164 = vector.broadcast %cst_58 : f32 to vector<8x384xf32>
    %165 = arith.mulf %164, %163 : vector<8x384xf32>
    %cst_59 = arith.constant 5.000000e-01 : f32
    %166 = vector.broadcast %cst_59 : f32 to vector<8x384xf32>
    %167 = arith.addf %165, %166 : vector<8x384xf32>
    %168 = vector.extract_strided_slice %167 {offsets = [0, 0], sizes = [8, 128], strides = [1, 1]} : vector<8x384xf32> to vector<8x128xf32>
    %169 = vector.extract_strided_slice %167 {offsets = [0, 128], sizes = [8, 128], strides = [1, 1]} : vector<8x384xf32> to vector<8x128xf32>
    %170 = vector.extract_strided_slice %167 {offsets = [0, 256], sizes = [8, 128], strides = [1, 1]} : vector<8x384xf32> to vector<8x128xf32>
    %171 = vector.extract_strided_slice %159 {offsets = [0, 384], sizes = [8, 128], strides = [1, 1]} : vector<8x512xf32> to vector<8x128xf32>
    %172 = math.tanh %171 : vector<8x128xf32>
    %173 = arith.mulf %169, %152 : vector<8x128xf32>
    %174 = arith.mulf %168, %172 : vector<8x128xf32>
    %175 = arith.addf %173, %174 : vector<8x128xf32>
    %176 = math.tanh %175 : vector<8x128xf32>
    %177 = arith.mulf %170, %176 : vector<8x128xf32>
    %c56 = arith.constant 56 : index
    %c0_60 = arith.constant 0 : index
    %178 = vector.load %arg7[%c56, %c0_60] : memref<64x512xf32, #tpu.memory_space<vmem>>, vector<8x512xf32>
    %179 = arith.truncf %177 : vector<8x128xf32> to vector<8x128xbf16>
    %c0_61 = arith.constant 0 : index
    %c0_62 = arith.constant 0 : index
    %180 = vector.load %arg8[%c0_61, %c0_62] : memref<128x512xbf16, #tpu.memory_space<vmem>>, vector<128x512xbf16>
    %cst_63 = arith.constant dense<0.000000e+00> : vector<8x512xf32>
    %181 = tpu.matmul %179, %180, %cst_63 {dimension_numbers = #tpu.dot_dimension_numbers<[1], [0], [0], [1], [0, 0, 1, 1], [], []>} : vector<8x128xbf16>, vector<128x512xbf16>, vector<8x512xf32> -> vector<8x512xf32>
    %182 = arith.addf %178, %181 : vector<8x512xf32>
    %183 = vector.extract_strided_slice %182 {offsets = [0, 0], sizes = [8, 384], strides = [1, 1]} : vector<8x512xf32> to vector<8x384xf32>
    %cst_64 = arith.constant 5.000000e-01 : f32
    %184 = vector.broadcast %cst_64 : f32 to vector<8x384xf32>
    %185 = arith.mulf %184, %183 : vector<8x384xf32>
    %186 = math.tanh %185 : vector<8x384xf32>
    %cst_65 = arith.constant 5.000000e-01 : f32
    %187 = vector.broadcast %cst_65 : f32 to vector<8x384xf32>
    %188 = arith.mulf %187, %186 : vector<8x384xf32>
    %cst_66 = arith.constant 5.000000e-01 : f32
    %189 = vector.broadcast %cst_66 : f32 to vector<8x384xf32>
    %190 = arith.addf %188, %189 : vector<8x384xf32>
    %191 = vector.extract_strided_slice %190 {offsets = [0, 0], sizes = [8, 128], strides = [1, 1]} : vector<8x384xf32> to vector<8x128xf32>
    %192 = vector.extract_strided_slice %190 {offsets = [0, 128], sizes = [8, 128], strides = [1, 1]} : vector<8x384xf32> to vector<8x128xf32>
    %193 = vector.extract_strided_slice %190 {offsets = [0, 256], sizes = [8, 128], strides = [1, 1]} : vector<8x384xf32> to vector<8x128xf32>
    %194 = vector.extract_strided_slice %182 {offsets = [0, 384], sizes = [8, 128], strides = [1, 1]} : vector<8x512xf32> to vector<8x128xf32>
    %195 = math.tanh %194 : vector<8x128xf32>
    %196 = arith.mulf %192, %175 : vector<8x128xf32>
    %197 = arith.mulf %191, %195 : vector<8x128xf32>
    %198 = arith.addf %196, %197 : vector<8x128xf32>
    %199 = math.tanh %198 : vector<8x128xf32>
    %200 = arith.mulf %193, %199 : vector<8x128xf32>
    %c1_i32_67 = arith.constant 1 : i32
    %201 = tpu.memref_slice %arg11[%c1_i32_67] : memref<3x!tpu.dma_semaphore, #tpu.memory_space<semaphore_mem>> -> memref<1x!tpu.dma_semaphore, #tpu.memory_space<semaphore_mem>>
    %202 = tpu.memref_squeeze %201 : memref<1x!tpu.dma_semaphore, #tpu.memory_space<semaphore_mem>> -> memref<!tpu.dma_semaphore, #tpu.memory_space<semaphore_mem>>
    tpu.wait_dma2 semaphore(%202 : memref<!tpu.dma_semaphore, #tpu.memory_space<semaphore_mem>>) src(%arg4 : memref<128x128xf32, #tpu.memory_space<any>>) dst(%arg9 : memref<128x128xf32, #tpu.memory_space<vmem>>)
    %c2_i32_68 = arith.constant 2 : i32
    %203 = tpu.memref_slice %arg11[%c2_i32_68] : memref<3x!tpu.dma_semaphore, #tpu.memory_space<semaphore_mem>> -> memref<1x!tpu.dma_semaphore, #tpu.memory_space<semaphore_mem>>
    %204 = tpu.memref_squeeze %203 : memref<1x!tpu.dma_semaphore, #tpu.memory_space<semaphore_mem>> -> memref<!tpu.dma_semaphore, #tpu.memory_space<semaphore_mem>>
    tpu.wait_dma2 semaphore(%204 : memref<!tpu.dma_semaphore, #tpu.memory_space<semaphore_mem>>) src(%arg5 : memref<1x128xf32, #tpu.memory_space<any>>) dst(%arg10 : memref<1x128xf32, #tpu.memory_space<vmem>>)
    %c0_69 = arith.constant 0 : index
    %c0_70 = arith.constant 0 : index
    %205 = vector.load %arg9[%c0_69, %c0_70] : memref<128x128xf32, #tpu.memory_space<vmem>>, vector<128x128xf32>
    %cst_71 = arith.constant dense<0.000000e+00> : vector<8x128xf32>
    %206 = tpu.matmul %200, %205, %cst_71 {dimension_numbers = #tpu.dot_dimension_numbers<[1], [0], [0], [1], [0, 0, 1, 1], [], []>} : vector<8x128xf32>, vector<128x128xf32>, vector<8x128xf32> -> vector<8x128xf32>
    %c0_72 = arith.constant 0 : index
    %c0_73 = arith.constant 0 : index
    %207 = vector.load %arg10[%c0_72, %c0_73] : memref<1x128xf32, #tpu.memory_space<vmem>>, vector<1x128xf32>
    %208 = vector.broadcast %207 : vector<1x128xf32> to vector<8x128xf32>
    %209 = arith.addf %206, %208 : vector<8x128xf32>
    %c0_74 = arith.constant 0 : index
    %c0_75 = arith.constant 0 : index
    %210 = vector.load %arg6[%c0_74, %c0_75] : memref<8x128xf32, #tpu.memory_space<vmem>>, vector<8x128xf32>
    tpu.vector_store %arg6[%c0_74, %c0_75], %209 {strides = array<i32>} : memref<8x128xf32, #tpu.memory_space<vmem>>, vector<8x128xf32>,
    return
  }
}

</mosaic_0001>

<bundles_post_ra>
// kernel: lstm_classifier_pallas.1
= control target key start
LH: loop header
LB: loop body
LE: loop exit
PB: predicated region body
PF: predicated region fallthrough
CT: control target
= control target key end

     0   :  { %s22_s21 = sld [smem:[#allocation0]]   ;;  %s1688_s22 = smov [#allocation3]   ;;  %s2308_s0 = inlined_call_operand.vmem [shape: f32[64,8], index: 0, kind: input, shape index: {}]   ;;  %s2309_s1 = inlined_call_operand.vmem [shape: f32[8,512], index: 1, kind: input, shape index: {}]   ;;  %s2310_s2 = inlined_call_operand.vmem [shape: f32[1,512], index: 2, kind: input, shape index: {}]   ;;  %s2311_s3 = inlined_call_operand.hbm [shape: bf16[128,512], index: 3, kind: input, shape index: {}]   ;;  %s2312_s4 = inlined_call_operand.hbm [shape: f32[128,128], index: 4, kind: input, shape index: {}]   ;;  %s2313_s5 = inlined_call_operand.vmem [shape: f32[1,128], index: 5, kind: input, shape index: {}]   ;;  %s2314_s6 = inlined_call_operand.vmem [shape: f32[8,128], index: 6, kind: output, shape index: {}]  }
   0x1   :  { %s30_s23 = sshll.u32 %s1688_s22, 4  ;;  %s1689_s24 = smov 512   ;;  %s31_s23 = int_to_ptr.vmem [resolvable:$true] %s30_s23 }
   0x2   :  { %34 = sst [smem:[#allocation8]] %s1689_s24  ;;  %s1690_s25 = smov 4  }
   0x3   :  { %36 = sst [smem:[#allocation8 + $0x1]] %s1689_s24  ;;  %s1691_s26 = smov 64  }
   0x4   :  { %38 = sst [smem:[#allocation8 + $0x2]] %s1690_s25  ;;  %s1692_s28 = smov 128  }
   0x5   :  { %40 = sst [smem:[#allocation8 + $0x3]] %s1691_s26  ;;  %s1693_s30 = smov 2  }
   0x6   :  { %s1468_s27 = sshll.u32 %s22_s21, 26  ;;  %42 = sst [smem:[#allocation8 + $0x4]] %s1692_s28 }
   0x7   :  { %s1469_s29 = sadd.s32 134217728, %s1468_s27  ;;  %44 = sst [smem:[#allocation8 + $0x5]] %s1693_s30 }
   0x8   :  { %s1694_s7 = smov 256   ;;  %48 = sst [smem:[#allocation8 + $0x7]] %s1691_s26 }
   0x9   :  { %46 = sst [smem:[#allocation8 + $0x6]] %s1694_s7  ;;  %s1695_s8 = smov [#allocation6]  }
   0xa   :  { %50 = sst [smem:[#allocation8 + $0x8]] %s1690_s25  ;;  %s1696_s9 = smov [#allocation7]  }
   0xb   :  { %52 = dma.general %s2311_s3, 4096, %s31_s23, %s1695_s8, %s1696_s9, [#allocation8], %s1469_s29, 0  }
   0xc   :  { %s1697_s12 = smov [#allocation4]   ;;  %s1660_s16 = scalar_lea.hbm %s2312_s4, 2048 }
   0xd   :  { %s61_s13 = sshll.u32 %s1697_s12, 4  ;;  %p1661_p0 = scmp.ne.s32.totalorder %s2312_s4, %s1660_s16  ;;  %s62_s13 = int_to_ptr.vmem [resolvable:$true] %s61_s13 }
   0xe   :  { %p1664_p1 = scmp.lt.u32.totalorder %s1660_s16, %s2312_s4 }
  0x10   :  { %p1666_p2 = pnand %p1664_p1, %p1661_p0 }
  0x12   :  { %1669 = shalt.err (!%p1666_p2)  }
  0x13   :  { %s1670_s21 = scalar_lea.vmem %s62_s13, 2048  ;;  %p1675_p4 = scmp.lt.s32.totalorder %s62_s13, %s62_s13 }
  0x14   :  { %p1671_p3 = scmp.ne.s32.totalorder %s62_s13, %s1670_s21  ;;  %p1676_p5 = scmp.lt.s32.totalorder %s1670_s21, %s1670_s21 }
  0x16   :  { %p1677_p6 = por %p1676_p5, %p1675_p4 }
  0x18   :  { %p1678_p7 = pnand %p1677_p6, %p1671_p3 }
  0x1a   :  { %1681 = shalt.err (!%p1678_p7)  }
  0x1b   :  { %64 = dma.hbm_to_vmem [thread:$0]  %s2312_s4, 2048, %s62_s13, [#allocation6 + $0x1]  ;;  %v83_v0 = vld [vmem:[%s2313_s5] sm:$0x1] }
  0x1c   :  { %84 = vst [vmem:[#allocation5] sm:$0x1] %v83_v0 }
  0x1d   :  { %109 = vsyncadd [#allocation6 + $0x2], 16  ;;  %v119_v1 = vld [vmem:[%s2309_s1 + $0x8] sm:$0xff]  ;;  %v121_v2 = vld [vmem:[%s2309_s1 + $0x18] sm:$0xff]  ;;  %vm144_vm0 = vcmask 64512   ;;  %v2315_v6 = vmov 0.0   ;;  %v124_v14 = vlaneseq }
  0x1e   :  { %169 = vmatprep.subr.mxu0 %v119_v1  ;;  %282 = vmatprep.subr.mxu1 %v121_v2  ;;  %v118_v3 = vld [vmem:[%s2309_s1] sm:$0xff]  ;;  %v120_v4 = vld [vmem:[%s2309_s1 + $0x10] sm:$0xff]  ;;  %v111_v7 = vld [vmem:[%s2308_s0 + $0x8] sm:$0xff] }
  0x1f   :  { %v110_v5 = vld [vmem:[%s2308_s0] sm:$0xff]  ;;  %170 = vmatpush1.msra.mxu0 %v118_v3  ;;  %233 = vmatprep.mubr.f32.mxu0 %v2315_v6  ;;  %v112_v8 = vld [vmem:[%s2308_s0 + $0x10] sm:$0xff]  ;;  %v113_v9 = vld [vmem:[%s2308_s0 + $0x18] sm:$0xff]  ;;  %v125_v15 = vshrl.u32 %v124_v14, 7 }
  0x20   :  { %283 = vmatpush1.msra.mxu1 %v120_v4  ;;  %346 = vmatprep.mubr.f32.mxu1 %v2315_v6  ;;  %v114_v10 = vld [vmem:[%s2308_s0 + $0x20] sm:$0xff]  ;;  %v115_v11 = vld [vmem:[%s2308_s0 + $0x28] sm:$0xff]  ;;  %v116_v12 = vld [vmem:[%s2308_s0 + $0x30] sm:$0xff] }
  0x21   :  { %1470 = vmatmul.mubr.msk.f32.vlgmr.msra.gmra.mrb[0].mxu0 %vm144_vm0, %v110_v5  ;;  %1478 = vmatmul.mubr.msk.f32.vlgmr.msra.gmra.mrb[0].mxu1 %vm144_vm0, %v110_v5  ;;  %v117_v13 = vld [vmem:[%s2308_s0 + $0x38] sm:$0xff]  ;;  %v126_v16 = vsub.s32 0, %v125_v15  ;;  %v134_v17 = vsub.s32 2, %v125_v15  ;;  %v122_v18 = vld [vmem:[%s2310_s2] sm:$0xf]  ;;  %v130_v19 = vsub.s32 1, %v125_v15 }
  0x22   :  { %239 = vmatprep.mubr.f32.mxu0 %v2315_v6  ;;  %352 = vmatprep.mubr.f32.mxu1 %v2315_v6  ;;  %v138_v20 = vsub.s32 3, %v125_v15 }
  0x23   :  { %v127_v21 = vrot.slane %v122_v18, %v126_v16  ;;  %v135_v22 = vrot.slane %v122_v18, %v134_v17  ;;  %v1826_v23 = vrot.slane %v122_v18, %v130_v19 }
  0x24   :  { %v1828_v24 = vrot.slane %v122_v18, %v138_v20 }
  0x25   :  { %1471 = vmatmul.mubr.msk.f32.gmra.mrb[2].mxu0 %vm144_vm0, %v111_v7  ;;  %1479 = vmatmul.mubr.msk.f32.gmra.mrb[2].mxu1 %vm144_vm0, %v111_v7 }
  0x26   :  { %245 = vmatprep.mubr.f32.mxu0 %v2315_v6  ;;  %358 = vmatprep.mubr.f32.mxu1 %v2315_v6 }
  0x29   :  { %1472 = vmatmul.mubr.msk.f32.gmra.mrb[4].mxu0 %vm144_vm0, %v112_v8  ;;  %1480 = vmatmul.mubr.msk.f32.gmra.mrb[4].mxu1 %vm144_vm0, %v112_v8 }
  0x2a   :  { %251 = vmatprep.mubr.f32.mxu0 %v2315_v6  ;;  %364 = vmatprep.mubr.f32.mxu1 %v2315_v6 }
  0x2d   :  { %1473 = vmatmul.mubr.msk.f32.gmra.mrb[6].mxu0 %vm144_vm0, %v113_v9  ;;  %1481 = vmatmul.mubr.msk.f32.gmra.mrb[6].mxu1 %vm144_vm0, %v113_v9 }
  0x2e   :  { %257 = vmatprep.mubr.f32.mxu0 %v2315_v6  ;;  %370 = vmatprep.mubr.f32.mxu1 %v2315_v6 }
  0x31   :  { %1474 = vmatmul.mubr.msk.f32.gmra.mrb[8].mxu0 %vm144_vm0, %v114_v10  ;;  %1482 = vmatmul.mubr.msk.f32.gmra.mrb[8].mxu1 %vm144_vm0, %v114_v10 }
  0x32   :  { %263 = vmatprep.mubr.f32.mxu0 %v2315_v6  ;;  %376 = vmatprep.mubr.f32.mxu1 %v2315_v6 }
  0x35   :  { %1475 = vmatmul.mubr.msk.f32.gmra.mrb[10].mxu0 %vm144_vm0, %v115_v11  ;;  %1483 = vmatmul.mubr.msk.f32.gmra.mrb[10].mxu1 %vm144_vm0, %v115_v11 }
  0x36   :  { %269 = vmatprep.mubr.f32.mxu0 %v2315_v6  ;;  %382 = vmatprep.mubr.f32.mxu1 %v2315_v6 }
  0x39   :  { %1476 = vmatmul.mubr.msk.f32.gmra.mrb[12].mxu0 %vm144_vm0, %v116_v12  ;;  %1484 = vmatmul.mubr.msk.f32.gmra.mrb[12].mxu1 %vm144_vm0, %v116_v12 }
  0x3a   :  { %275 = vmatprep.mubr.f32.mxu0 %v2315_v6  ;;  %388 = vmatprep.mubr.f32.mxu1 %v2315_v6 }
  0x3d   :  { %1477 = vmatmul.mubr.msk.f32.gmra.mrb[14].mxu0 %vm144_vm0, %v117_v13  ;;  %1485 = vmatmul.mubr.msk.f32.gmra.mrb[14].mxu1 %vm144_vm0, %v117_v13 }
  0xf4   :  { %v235_v25 = vpop.f32.mrb[0].mxu0  ;;  %v348_v26 = vpop.f32.mrb[0].mxu1 }
  0xf5   :  { %v1830_v27 = vadd.f32 %v235_v25, %v127_v21  ;;  %v1832_v28 = vadd.f32 %v348_v26, %v135_v22  ;;  %v237_v29 = vpop.f32.mrb[1].mxu0  ;;  %v350_v30 = vpop.f32.mrb[1].mxu1 }
  0xf6   :  { %v1835_v31 = vadd.f32 %v237_v29, %v1826_v23  ;;  %v1838_v32 = vadd.f32 %v350_v30, %v1828_v24 }
  0xf8   :  { %v241_v33 = vpop.f32.mrb[2].mxu0  ;;  %v354_v34 = vpop.f32.mrb[2].mxu1 }
  0xf9   :  { %v1840_v35 = vadd.f32 %v241_v33, %v127_v21  ;;  %v1842_v36 = vadd.f32 %v354_v34, %v135_v22  ;;  %v243_v37 = vpop.f32.mrb[3].mxu0  ;;  %v356_v38 = vpop.f32.mrb[3].mxu1 }
  0xfa   :  { %v1845_v39 = vadd.f32 %v243_v37, %v1826_v23  ;;  %v1848_v40 = vadd.f32 %v356_v38, %v1828_v24 }
  0xfc   :  { %v247_v41 = vpop.f32.mrb[4].mxu0  ;;  %v360_v42 = vpop.f32.mrb[4].mxu1 }
  0xfd   :  { %v1850_v43 = vadd.f32 %v247_v41, %v127_v21  ;;  %v1852_v44 = vadd.f32 %v360_v42, %v135_v22  ;;  %v249_v45 = vpop.f32.mrb[5].mxu0  ;;  %v362_v46 = vpop.f32.mrb[5].mxu1 }
  0xfe   :  { %v1855_v47 = vadd.f32 %v249_v45, %v1826_v23  ;;  %v1858_v48 = vadd.f32 %v362_v46, %v1828_v24 }
 0x100   :  { %v253_v49 = vpop.f32.mrb[6].mxu0  ;;  %v366_v50 = vpop.f32.mrb[6].mxu1 }
 0x101   :  { %v1860_v51 = vadd.f32 %v253_v49, %v127_v21  ;;  %v1862_v52 = vadd.f32 %v366_v50, %v135_v22  ;;  %v255_v53 = vpop.f32.mrb[7].mxu0  ;;  %v368_v54 = vpop.f32.mrb[7].mxu1 }
 0x102   :  { %v1865_v55 = vadd.f32 %v255_v53, %v1826_v23  ;;  %v1868_v56 = vadd.f32 %v368_v54, %v1828_v24 }
 0x103   :  { %2318 = vst [vmem:[#allocation17_spill] sm:$0xff] %v1862_v52 }
 0x104   :  { %2319 = vst [vmem:[#allocation18_spill] sm:$0xff] %v1865_v55  ;;  %2320 = vst [vmem:[#allocation19_spill] sm:$0xff] %v1868_v56  ;;  %v259_v57 = vpop.f32.mrb[8].mxu0  ;;  %v372_v58 = vpop.f32.mrb[8].mxu1 }
 0x105   :  { %v1870_v59 = vadd.f32 %v259_v57, %v127_v21  ;;  %v1872_v60 = vadd.f32 %v372_v58, %v135_v22  ;;  %v261_v61 = vpop.f32.mrb[9].mxu0  ;;  %v374_v62 = vpop.f32.mrb[9].mxu1 }
 0x106   :  { %v1875_v63 = vadd.f32 %v261_v61, %v1826_v23  ;;  %v1878_v0 = vadd.f32 %v374_v62, %v1828_v24 }
 0x107   :  { %2321 = vst [vmem:[#allocation20_spill] sm:$0xff] %v1870_v59  ;;  %2322 = vst [vmem:[#allocation21_spill] sm:$0xff] %v1872_v60 }
 0x108   :  { %2323 = vst [vmem:[#allocation22_spill] sm:$0xff] %v1875_v63  ;;  %2324 = vst [vmem:[#allocation23_spill] sm:$0xff] %v1878_v0  ;;  %v265_v1 = vpop.f32.mrb[10].mxu0  ;;  %v378_v2 = vpop.f32.mrb[10].mxu1 }
 0x109   :  { %v1880_v3 = vadd.f32 %v265_v1, %v127_v21  ;;  %v1882_v4 = vadd.f32 %v378_v2, %v135_v22  ;;  %v267_v5 = vpop.f32.mrb[11].mxu0  ;;  %v380_v7 = vpop.f32.mrb[11].mxu1 }
 0x10a   :  { %v1885_v8 = vadd.f32 %v267_v5, %v1826_v23  ;;  %v1888_v9 = vadd.f32 %v380_v7, %v1828_v24 }
 0x10b   :  { %2325 = vst [vmem:[#allocation24_spill] sm:$0xff] %v1880_v3  ;;  %2326 = vst [vmem:[#allocation25_spill] sm:$0xff] %v1882_v4 }
 0x10c   :  { %2327 = vst [vmem:[#allocation26_spill] sm:$0xff] %v1885_v8  ;;  %2328 = vst [vmem:[#allocation27_spill] sm:$0xff] %v1888_v9  ;;  %v271_v10 = vpop.f32.mrb[12].mxu0  ;;  %v384_v11 = vpop.f32.mrb[12].mxu1 }
 0x10d   :  { %v1890_v12 = vadd.f32 %v271_v10, %v127_v21  ;;  %v1892_v13 = vadd.f32 %v384_v11, %v135_v22  ;;  %v273_v14 = vpop.f32.mrb[13].mxu0  ;;  %v386_v15 = vpop.f32.mrb[13].mxu1 }
 0x10e   :  { %v1895_v16 = vadd.f32 %v273_v14, %v1826_v23  ;;  %v1898_v17 = vadd.f32 %v386_v15, %v1828_v24 }
 0x10f   :  { %2329 = vst [vmem:[#allocation28_spill] sm:$0xff] %v1890_v12  ;;  %2330 = vst [vmem:[#allocation29_spill] sm:$0xff] %v1892_v13 }
 0x110   :  { %2331 = vst [vmem:[#allocation30_spill] sm:$0xff] %v1895_v16  ;;  %2332 = vst [vmem:[#allocation31_spill] sm:$0xff] %v1898_v17  ;;  %v277_v18 = vpop.f32.mrb[14].mxu0  ;;  %v390_v19 = vpop.f32.mrb[14].mxu1 }
 0x111   :  { %v1900_v20 = vadd.f32 %v277_v18, %v127_v21  ;;  %v1902_v25 = vadd.f32 %v390_v19, %v135_v22  ;;  %v279_v26 = vpop.f32.mrb[15].mxu0  ;;  %v392_v29 = vpop.f32.mrb[15].mxu1 }
 0x112   :  { %v1905_v30 = vadd.f32 %v279_v26, %v1826_v23  ;;  %v1908_v33 = vadd.f32 %v392_v29, %v1828_v24 }
 0x113   :  { %2333 = vst [vmem:[#allocation32_spill] sm:$0xff] %v1900_v20  ;;  %2334 = vst [vmem:[#allocation33_spill] sm:$0xff] %v1902_v25 }
 0x114   :  { %2335 = vst [vmem:[#allocation34_spill] sm:$0xff] %v1905_v30  ;;  %2336 = vst [vmem:[#allocation35_spill] sm:$0xff] %v1908_v33 }
 0x115   :  { %1682 = dma.done.wait [#allocation6], 4096 }
 0x116   :  { %1683 = vsyncadd [#allocation6], 4294963200  ;;  %v2316_v34 = vmov 0   ;;  %v1912_v37 = vld [vmem:[#allocation3 + $0x8] sm:$0xff]  ;;  %v1914_v21 = vld [vmem:[#allocation3] sm:$0xff]  ;;  %v2337_v25 = vmov 0  }
 0x117   :  { %499 = vmatprep.mubr.bf16.mxu0 %v2316_v34  ;;  %540 = vmatprep.mubr.bf16.mxu1 %v2316_v34  ;;  %v1916_v22 = vld [vmem:[#allocation3 + $0x18] sm:$0xff]  ;;  %v1920_v23 = vld [vmem:[#allocation3 + $0x28] sm:$0xff]  ;;  %v1922_v24 = vld [vmem:[#allocation3 + $0x10] sm:$0xff] }
 0x118   :  { %467 = vmatprep.subr.bf16.mxu0 %v1912_v37  ;;  %508 = vmatprep.subr.bf16.mxu1 %v1916_v22  ;;  %v1926_v38 = vld [vmem:[#allocation3 + $0x38] sm:$0xff]  ;;  %v1929_v41 = vld [vmem:[#allocation3 + $0x20] sm:$0xff]  ;;  %v1932_v42 = vld [vmem:[#allocation3 + $0x30] sm:$0xff] }
 0x119   :  { %468 = vmatpush1.bf16.msra.mxu0 %v1914_v21  ;;  %509 = vmatpush1.bf16.msra.mxu1 %v1922_v24  ;;  %v1934_v45 = vld [vmem:[#allocation3 + $0x48] sm:$0xff]  ;;  %v1936_v46 = vld [vmem:[#allocation3 + $0x58] sm:$0xff]  ;;  %v1941_v49 = vld [vmem:[#allocation3 + $0x40] sm:$0xff] }
 0x11a   :  { %469 = vmatprep.subr.bf16.mxu0 %v1920_v23  ;;  %510 = vmatprep.subr.bf16.mxu1 %v1926_v38  ;;  %v1944_v50 = vld [vmem:[#allocation3 + $0x50] sm:$0xff]  ;;  %v1946_v53 = vld [vmem:[#allocation3 + $0x68] sm:$0xff]  ;;  %v1948_v54 = vld [vmem:[#allocation3 + $0x78] sm:$0xff] }
 0x11b   :  { %v1953_v57 = vld [vmem:[#allocation3 + $0x60] sm:$0xff]  ;;  %v1956_v58 = vld [vmem:[#allocation3 + $0x70] sm:$0xff]  ;;  %v1958_v61 = vld [vmem:[#allocation3 + $0x88] sm:$0xff] }
 0x11c   :  { %v1960_v62 = vld [vmem:[#allocation3 + $0x98] sm:$0xff]  ;;  %v1965_v1 = vld [vmem:[#allocation3 + $0x80] sm:$0xff]  ;;  %v1968_v2 = vld [vmem:[#allocation3 + $0x90] sm:$0xff] }
 0x11d   :  { %470 = vmatpush1.bf16.msra.mxu0 %v1929_v41  ;;  %511 = vmatpush1.bf16.msra.mxu1 %v1932_v42  ;;  %v1970_v5 = vld [vmem:[#allocation3 + $0xa8] sm:$0xff]  ;;  %v1972_v7 = vld [vmem:[#allocation3 + $0xb8] sm:$0xff]  ;;  %v1977_v10 = vld [vmem:[#allocation3 + $0xa0] sm:$0xff] }
 0x11e   :  { %471 = vmatprep.subr.bf16.mxu0 %v1934_v45  ;;  %512 = vmatprep.subr.bf16.mxu1 %v1936_v46  ;;  %v1980_v11 = vld [vmem:[#allocation3 + $0xb0] sm:$0xff]  ;;  %v1982_v14 = vld [vmem:[#allocation3 + $0xc8] sm:$0xff]  ;;  %v1984_v15 = vld [vmem:[#allocation3 + $0xd8] sm:$0xff] }
 0x11f   :  { %v1989_v18 = vld [vmem:[#allocation3 + $0xc0] sm:$0xff]  ;;  %v1992_v19 = vld [vmem:[#allocation3 + $0xd0] sm:$0xff]  ;;  %v1994_v26 = vld [vmem:[#allocation3 + $0xe8] sm:$0xff] }
 0x120   :  { %v1996_v29 = vld [vmem:[#allocation3 + $0xf8] sm:$0xff]  ;;  %v2001_v6 = vld [vmem:[#allocation3 + $0xe0] sm:$0xff]  ;;  %v2004_v34 = vld [vmem:[#allocation3 + $0xf0] sm:$0xff] }
 0x121   :  { %472 = vmatpush1.bf16.msra.mxu0 %v1941_v49  ;;  %513 = vmatpush1.bf16.msra.mxu1 %v1944_v50 }
 0x122   :  { %473 = vmatprep.subr.bf16.mxu0 %v1946_v53  ;;  %514 = vmatprep.subr.bf16.mxu1 %v1948_v54 }
 0x125   :  { %474 = vmatpush1.bf16.msra.mxu0 %v1953_v57  ;;  %515 = vmatpush1.bf16.msra.mxu1 %v1956_v58 }
 0x126   :  { %475 = vmatprep.subr.bf16.mxu0 %v1958_v61  ;;  %516 = vmatprep.subr.bf16.mxu1 %v1960_v62 }
 0x129   :  { %476 = vmatpush1.bf16.msra.mxu0 %v1965_v1  ;;  %517 = vmatpush1.bf16.msra.mxu1 %v1968_v2 }
 0x12a   :  { %477 = vmatprep.subr.bf16.mxu0 %v1970_v5  ;;  %518 = vmatprep.subr.bf16.mxu1 %v1972_v7 }
 0x12d   :  { %478 = vmatpush1.bf16.msra.mxu0 %v1977_v10  ;;  %519 = vmatpush1.bf16.msra.mxu1 %v1980_v11 }
 0x12e   :  { %479 = vmatprep.subr.bf16.mxu0 %v1982_v14  ;;  %520 = vmatprep.subr.bf16.mxu1 %v1984_v15 }
 0x131   :  { %480 = vmatpush1.bf16.msra.mxu0 %v1989_v18  ;;  %521 = vmatpush1.bf16.msra.mxu1 %v1992_v19 }
 0x132   :  { %481 = vmatprep.subr.bf16.mxu0 %v1994_v26  ;;  %522 = vmatprep.subr.bf16.mxu1 %v1996_v29 }
 0x135   :  { %482 = vmatpush1.bf16.msra.mxu0 %v2001_v6  ;;  %523 = vmatpush1.bf16.msra.mxu1 %v2004_v34 }
 0x136   :  { %576 = vmatprep.subr.bf16.mxu0 %v1912_v37  ;;  %617 = vmatprep.subr.bf16.mxu1 %v1916_v22 }
 0x138   :  { %500 = vmatmul.mubr.bf16.vlgmr.msra.gmra.mrb[16].mxu0 %v2337_v25  ;;  %541 = vmatmul.mubr.bf16.vlgmr.msra.gmra.mrb[16].mxu1 %v2337_v25 }
 0x139   :  { %577 = vmatpush1.bf16.msra.mxu0 %v1914_v21  ;;  %618 = vmatpush1.bf16.msra.mxu1 %v1922_v24 }
 0x13a   :  { %578 = vmatprep.subr.bf16.mxu0 %v1920_v23  ;;  %619 = vmatprep.subr.bf16.mxu1 %v1926_v38 }
 0x13b   :  { %608 = vmatprep.mubr.bf16.mxu0 %v2337_v25  ;;  %649 = vmatprep.mubr.bf16.mxu1 %v2337_v25 }
 0x13d   :  { %579 = vmatpush1.bf16.msra.mxu0 %v1929_v41  ;;  %620 = vmatpush1.bf16.msra.mxu1 %v1932_v42 }
 0x13e   :  { %580 = vmatprep.subr.bf16.mxu0 %v1934_v45  ;;  %621 = vmatprep.subr.bf16.mxu1 %v1936_v46 }
 0x141   :  { %581 = vmatpush1.bf16.msra.mxu0 %v1941_v49  ;;  %622 = vmatpush1.bf16.msra.mxu1 %v1944_v50 }
 0x142   :  { %582 = vmatprep.subr.bf16.mxu0 %v1946_v53  ;;  %623 = vmatprep.subr.bf16.mxu1 %v1948_v54 }
 0x145   :  { %583 = vmatpush1.bf16.msra.mxu0 %v1953_v57  ;;  %624 = vmatpush1.bf16.msra.mxu1 %v1956_v58 }
 0x146   :  { %584 = vmatprep.subr.bf16.mxu0 %v1958_v61  ;;  %625 = vmatprep.subr.bf16.mxu1 %v1960_v62 }
 0x149   :  { %585 = vmatpush1.bf16.msra.mxu0 %v1965_v1  ;;  %626 = vmatpush1.bf16.msra.mxu1 %v1968_v2 }
 0x14a   :  { %586 = vmatprep.subr.bf16.mxu0 %v1970_v5  ;;  %627 = vmatprep.subr.bf16.mxu1 %v1972_v7 }
 0x14d   :  { %587 = vmatpush1.bf16.msra.mxu0 %v1977_v10  ;;  %628 = vmatpush1.bf16.msra.mxu1 %v1980_v11 }
 0x14e   :  { %588 = vmatprep.subr.bf16.mxu0 %v1982_v14  ;;  %629 = vmatprep.subr.bf16.mxu1 %v1984_v15 }
 0x151   :  { %589 = vmatpush1.bf16.msra.mxu0 %v1989_v18  ;;  %630 = vmatpush1.bf16.msra.mxu1 %v1992_v19 }
 0x152   :  { %590 = vmatprep.subr.bf16.mxu0 %v1994_v26  ;;  %631 = vmatprep.subr.bf16.mxu1 %v1996_v29 }
 0x155   :  { %591 = vmatpush1.bf16.msra.mxu0 %v2001_v6  ;;  %632 = vmatpush1.bf16.msra.mxu1 %v2004_v34 }
 0x156   :  { %685 = vmatprep.subr.bf16.mxu0 %v1912_v37  ;;  %726 = vmatprep.subr.bf16.mxu1 %v1916_v22 }
 0x20b   :  { %v501_v33 = vpop.f32.mrb[16].mxu0  ;;  %v542_v30 = vpop.f32.mrb[16].mxu1 }
 0x20c   :  { %v549_v20 = vadd.f32 %v501_v33, %v1830_v27  ;;  %v503_v13 = vpop.f32.mrb[17].mxu0  ;;  %v544_v17 = vpop.f32.mrb[17].mxu1  ;;  %v551_v63 = vadd.f32 %v542_v30, %v1832_v28 }
 0x20d   :  { %v550_v16 = vadd.f32 %v503_v13, %v1835_v31  ;;  %v505_v12 = vpop.f32.mrb[18].mxu0  ;;  %v546_v4 = vpop.f32.mrb[18].mxu1  ;;  %v552_v3 = vadd.f32 %v544_v17, %v1838_v32 }
 0x20e   :  { %v553_v9 = vmul.f32 0.5, %v549_v20  ;;  %v506_v8 = vpop.f32.mrb[19].mxu0  ;;  %v547_v60 = vpop.f32.mrb[19].mxu1  ;;  %v555_v59 = vmul.f32 0.5, %v551_v63 }
 0x20f   :  { %v554_v0 = vmul.f32 0.5, %v550_v16 }
 0x210   :  { %1580 = vtanh.f32 %v553_v9 }
 0x211   :  { %1582 = vtanh.f32 %v554_v0 }
 0x212   :  { %1584 = vtanh.f32 %v552_v3 }
 0x213   :  { %1586 = vtanh.f32 %v555_v59 }
 0x21a   :  { %v1581_v52 = vpop.eup %1580 }
 0x21b   :  { %v1583_v27 = vpop.eup %1582  ;;  %v559_v33 = vmul.f32 0.5, %v1581_v52 }
 0x21c   :  { %v1585_v56 = vpop.eup %1584  ;;  %v560_v55 = vmul.f32 0.5, %v1583_v27 }
 0x21d   :  { %v562_v31 = vadd.f32 0.5, %v559_v33  ;;  %v1587_v32 = vpop.eup %1586 }
 0x21e   :  { %v563_v4 = vadd.f32 0.5, %v560_v55  ;;  %v561_v60 = vmul.f32 0.5, %v1587_v32 }
 0x21f   :  { %v567_v12 = vmul.f32 %v1585_v56, %v562_v31 }
 0x220   :  { %v566_v8 = vmul.f32 0.0, %v563_v4  ;;  %v564_v0 = vadd.f32 0.5, %v561_v60 }
 0x222   :  { %v2050_v13 = vadd.f32 %v567_v12, %v566_v8 }
 0x224   :  { %1588 = vtanh.f32 %v2050_v13 }
 0x22e   :  { %v1589_v3 = vpop.eup %1588 }
 0x22f   :  { %v570_v28 = vmul.f32 %v1589_v3, %v564_v0 }
 0x231   :  { %v575_v63 = vpack.c.bf16 %v570_v28, %v570_v28 }
 0x233   :  { %609 = vmatmul.mubr.bf16.vlgmr.msra.gmra.mrb[20].mxu0 %v575_v63  ;;  %650 = vmatmul.mubr.bf16.vlgmr.msra.gmra.mrb[20].mxu1 %v575_v63 }
 0x234   :  { %686 = vmatpush1.bf16.msra.mxu0 %v1914_v21  ;;  %727 = vmatpush1.bf16.msra.mxu1 %v1922_v24 }
 0x235   :  { %687 = vmatprep.subr.bf16.mxu0 %v1920_v23  ;;  %728 = vmatprep.subr.bf16.mxu1 %v1926_v38 }
 0x236   :  { %717 = vmatprep.mubr.bf16.mxu0 %v2337_v25  ;;  %758 = vmatprep.mubr.bf16.mxu1 %v2337_v25 }
 0x238   :  { %688 = vmatpush1.bf16.msra.mxu0 %v1929_v41  ;;  %729 = vmatpush1.bf16.msra.mxu1 %v1932_v42 }
 0x239   :  { %689 = vmatprep.subr.bf16.mxu0 %v1934_v45  ;;  %730 = vmatprep.subr.bf16.mxu1 %v1936_v46 }
 0x23c   :  { %690 = vmatpush1.bf16.msra.mxu0 %v1941_v49  ;;  %731 = vmatpush1.bf16.msra.mxu1 %v1944_v50 }
 0x23d   :  { %691 = vmatprep.subr.bf16.mxu0 %v1946_v53  ;;  %732 = vmatprep.subr.bf16.mxu1 %v1948_v54 }
 0x240   :  { %692 = vmatpush1.bf16.msra.mxu0 %v1953_v57  ;;  %733 = vmatpush1.bf16.msra.mxu1 %v1956_v58 }
 0x241   :  { %693 = vmatprep.subr.bf16.mxu0 %v1958_v61  ;;  %734 = vmatprep.subr.bf16.mxu1 %v1960_v62 }
 0x244   :  { %694 = vmatpush1.bf16.msra.mxu0 %v1965_v1  ;;  %735 = vmatpush1.bf16.msra.mxu1 %v1968_v2 }
 0x245   :  { %695 = vmatprep.subr.bf16.mxu0 %v1970_v5  ;;  %736 = vmatprep.subr.bf16.mxu1 %v1972_v7 }
 0x248   :  { %696 = vmatpush1.bf16.msra.mxu0 %v1977_v10  ;;  %737 = vmatpush1.bf16.msra.mxu1 %v1980_v11 }
 0x249   :  { %697 = vmatprep.subr.bf16.mxu0 %v1982_v14  ;;  %738 = vmatprep.subr.bf16.mxu1 %v1984_v15 }
 0x24c   :  { %698 = vmatpush1.bf16.msra.mxu0 %v1989_v18  ;;  %739 = vmatpush1.bf16.msra.mxu1 %v1992_v19 }
 0x24d   :  { %699 = vmatprep.subr.bf16.mxu0 %v1994_v26  ;;  %740 = vmatprep.subr.bf16.mxu1 %v1996_v29 }
 0x250   :  { %700 = vmatpush1.bf16.msra.mxu0 %v2001_v6  ;;  %741 = vmatpush1.bf16.msra.mxu1 %v2004_v34 }
 0x251   :  { %794 = vmatprep.subr.bf16.mxu0 %v1912_v37  ;;  %835 = vmatprep.subr.bf16.mxu1 %v1916_v22 }
 0x306   :  { %v610_v52 = vpop.f32.mrb[20].mxu0  ;;  %v651_v55 = vpop.f32.mrb[20].mxu1 }
 0x307   :  { %v658_v56 = vadd.f32 %v610_v52, %v1840_v35  ;;  %v612_v59 = vpop.f32.mrb[21].mxu0  ;;  %v653_v9 = vpop.f32.mrb[21].mxu1  ;;  %v660_v12 = vadd.f32 %v651_v55, %v1842_v36 }
 0x308   :  { %v659_v16 = vadd.f32 %v612_v59, %v1845_v39  ;;  %v614_v17 = vpop.f32.mrb[22].mxu0  ;;  %v655_v20 = vpop.f32.mrb[22].mxu1  ;;  %v661_v4 = vadd.f32 %v653_v9, %v1848_v40 }
 0x309   :  { %v662_v30 = vmul.f32 0.5, %v658_v56  ;;  %v615_v27 = vpop.f32.mrb[23].mxu0  ;;  %v656_v33 = vpop.f32.mrb[23].mxu1  ;;  %v664_v8 = vmul.f32 0.5, %v660_v12 }
 0x30a   :  { %v663_v31 = vmul.f32 0.5, %v659_v16 }
 0x30b   :  { %1590 = vtanh.f32 %v662_v30 }
 0x30c   :  { %1592 = vtanh.f32 %v663_v31 }
 0x30d   :  { %1594 = vtanh.f32 %v661_v4 }
 0x30e   :  { %1596 = vtanh.f32 %v664_v8 }
 0x315   :  { %v1591_v32 = vpop.eup %1590 }
 0x316   :  { %v668_v35 = vmul.f32 0.5, %v1591_v32  ;;  %v1593_v60 = vpop.eup %1592 }
 0x317   :  { %v669_v39 = vmul.f32 0.5, %v1593_v60  ;;  %v1595_v3 = vpop.eup %1594 }
 0x318   :  { %v671_v0 = vadd.f32 0.5, %v668_v35  ;;  %v1597_v40 = vpop.eup %1596 }
 0x319   :  { %v672_v28 = vadd.f32 0.5, %v669_v39  ;;  %v670_v59 = vmul.f32 0.5, %v1597_v40 }
 0x31a   :  { %v676_v63 = vmul.f32 %v1595_v3, %v671_v0 }
 0x31b   :  { %v675_v52 = vmul.f32 %v672_v28, %v2050_v13  ;;  %v673_v9 = vadd.f32 0.5, %v670_v59 }
 0x31d   :  { %v2092_v56 = vadd.f32 %v676_v63, %v675_v52 }
 0x31f   :  { %1598 = vtanh.f32 %v2092_v56 }
 0x329   :  { %v1599_v36 = vpop.eup %1598 }
 0x32a   :  { %v679_v55 = vmul.f32 %v1599_v36, %v673_v9 }
 0x32c   :  { %v684_v16 = vpack.c.bf16 %v679_v55, %v679_v55 }
 0x32e   :  { %718 = vmatmul.mubr.bf16.vlgmr.msra.gmra.mrb[24].mxu0 %v684_v16  ;;  %759 = vmatmul.mubr.bf16.vlgmr.msra.gmra.mrb[24].mxu1 %v684_v16 }
 0x32f   :  { %795 = vmatpush1.bf16.msra.mxu0 %v1914_v21  ;;  %836 = vmatpush1.bf16.msra.mxu1 %v1922_v24 }
 0x330   :  { %796 = vmatprep.subr.bf16.mxu0 %v1920_v23  ;;  %837 = vmatprep.subr.bf16.mxu1 %v1926_v38 }
 0x331   :  { %826 = vmatprep.mubr.bf16.mxu0 %v2337_v25  ;;  %867 = vmatprep.mubr.bf16.mxu1 %v2337_v25 }
 0x333   :  { %797 = vmatpush1.bf16.msra.mxu0 %v1929_v41  ;;  %838 = vmatpush1.bf16.msra.mxu1 %v1932_v42 }
 0x334   :  { %798 = vmatprep.subr.bf16.mxu0 %v1934_v45  ;;  %839 = vmatprep.subr.bf16.mxu1 %v1936_v46 }
 0x337   :  { %799 = vmatpush1.bf16.msra.mxu0 %v1941_v49  ;;  %840 = vmatpush1.bf16.msra.mxu1 %v1944_v50 }
 0x338   :  { %800 = vmatprep.subr.bf16.mxu0 %v1946_v53  ;;  %841 = vmatprep.subr.bf16.mxu1 %v1948_v54 }
 0x33b   :  { %801 = vmatpush1.bf16.msra.mxu0 %v1953_v57  ;;  %842 = vmatpush1.bf16.msra.mxu1 %v1956_v58 }
 0x33c   :  { %802 = vmatprep.subr.bf16.mxu0 %v1958_v61  ;;  %843 = vmatprep.subr.bf16.mxu1 %v1960_v62 }
 0x33f   :  { %803 = vmatpush1.bf16.msra.mxu0 %v1965_v1  ;;  %844 = vmatpush1.bf16.msra.mxu1 %v1968_v2 }
 0x340   :  { %804 = vmatprep.subr.bf16.mxu0 %v1970_v5  ;;  %845 = vmatprep.subr.bf16.mxu1 %v1972_v7 }
 0x343   :  { %805 = vmatpush1.bf16.msra.mxu0 %v1977_v10  ;;  %846 = vmatpush1.bf16.msra.mxu1 %v1980_v11 }
 0x344   :  { %806 = vmatprep.subr.bf16.mxu0 %v1982_v14  ;;  %847 = vmatprep.subr.bf16.mxu1 %v1984_v15 }
 0x347   :  { %807 = vmatpush1.bf16.msra.mxu0 %v1989_v18  ;;  %848 = vmatpush1.bf16.msra.mxu1 %v1992_v19 }
 0x348   :  { %808 = vmatprep.subr.bf16.mxu0 %v1994_v26  ;;  %849 = vmatprep.subr.bf16.mxu1 %v1996_v29 }
 0x34b   :  { %809 = vmatpush1.bf16.msra.mxu0 %v2001_v6  ;;  %850 = vmatpush1.bf16.msra.mxu1 %v2004_v34 }
 0x34c   :  { %903 = vmatprep.subr.bf16.mxu0 %v1912_v37  ;;  %944 = vmatprep.subr.bf16.mxu1 %v1916_v22 }
 0x401   :  { %v719_v13 = vpop.f32.mrb[24].mxu0  ;;  %v760_v17 = vpop.f32.mrb[24].mxu1 }
 0x402   :  { %v767_v20 = vadd.f32 %v719_v13, %v1850_v43  ;;  %v721_v30 = vpop.f32.mrb[25].mxu0  ;;  %v762_v27 = vpop.f32.mrb[25].mxu1  ;;  %v769_v0 = vadd.f32 %v760_v17, %v1852_v44 }
 0x403   :  { %v768_v33 = vadd.f32 %v721_v30, %v1855_v47  ;;  %v723_v31 = vpop.f32.mrb[26].mxu0  ;;  %v764_v4 = vpop.f32.mrb[26].mxu1  ;;  %v770_v60 = vadd.f32 %v762_v27, %v1858_v48 }
 0x404   :  { %v771_v12 = vmul.f32 0.5, %v767_v20  ;;  %v724_v8 = vpop.f32.mrb[27].mxu0  ;;  %v765_v32 = vpop.f32.mrb[27].mxu1  ;;  %v773_v39 = vmul.f32 0.5, %v769_v0  ;;  %v2338_v31 = vld [vmem:[#allocation18_spill] sm:$0xff] }
 0x405   :  { %v772_v35 = vmul.f32 0.5, %v768_v33 }
 0x406   :  { %1600 = vtanh.f32 %v771_v12 }
 0x407   :  { %1602 = vtanh.f32 %v772_v35 }
 0x408   :  { %1604 = vtanh.f32 %v770_v60 }
 0x409   :  { %1606 = vtanh.f32 %v773_v39  ;;  %v2339_v39 = vld [vmem:[#allocation19_spill] sm:$0xff] }
 0x410   :  { %v1601_v3 = vpop.eup %1600 }
 0x411   :  { %v777_v43 = vmul.f32 0.5, %v1601_v3  ;;  %v1603_v28 = vpop.eup %1602 }
 0x412   :  { %v778_v47 = vmul.f32 0.5, %v1603_v28  ;;  %v1605_v52 = vpop.eup %1604 }
 0x413   :  { %v780_v63 = vadd.f32 0.5, %v777_v43  ;;  %v1607_v48 = vpop.eup %1606  ;;  %v2340_v43 = vld [vmem:[#allocation17_spill] sm:$0xff] }
 0x414   :  { %v781_v40 = vadd.f32 0.5, %v778_v47  ;;  %v779_v55 = vmul.f32 0.5, %v1607_v48 }
 0x415   :  { %v785_v59 = vmul.f32 %v1605_v52, %v780_v63 }
 0x416   :  { %v784_v9 = vmul.f32 %v781_v40, %v2092_v56  ;;  %v782_v16 = vadd.f32 0.5, %v779_v55 }
 0x418   :  { %v2134_v36 = vadd.f32 %v785_v59, %v784_v9 }
 0x41a   :  { %1608 = vtanh.f32 %v2134_v36 }
 0x424   :  { %v1609_v44 = vpop.eup %1608 }
 0x425   :  { %v788_v13 = vmul.f32 %v1609_v44, %v782_v16 }
 0x427   :  { %v793_v17 = vpack.c.bf16 %v788_v13, %v788_v13 }
 0x429   :  { %827 = vmatmul.mubr.bf16.vlgmr.msra.gmra.mrb[28].mxu0 %v793_v17  ;;  %868 = vmatmul.mubr.bf16.vlgmr.msra.gmra.mrb[28].mxu1 %v793_v17 }
 0x42a   :  { %904 = vmatpush1.bf16.msra.mxu0 %v1914_v21  ;;  %945 = vmatpush1.bf16.msra.mxu1 %v1922_v24 }
 0x42b   :  { %905 = vmatprep.subr.bf16.mxu0 %v1920_v23  ;;  %946 = vmatprep.subr.bf16.mxu1 %v1926_v38 }
 0x42c   :  { %935 = vmatprep.mubr.bf16.mxu0 %v2337_v25  ;;  %976 = vmatprep.mubr.bf16.mxu1 %v2337_v25 }
 0x42e   :  { %906 = vmatpush1.bf16.msra.mxu0 %v1929_v41  ;;  %947 = vmatpush1.bf16.msra.mxu1 %v1932_v42 }
 0x42f   :  { %907 = vmatprep.subr.bf16.mxu0 %v1934_v45  ;;  %948 = vmatprep.subr.bf16.mxu1 %v1936_v46 }
 0x432   :  { %908 = vmatpush1.bf16.msra.mxu0 %v1941_v49  ;;  %949 = vmatpush1.bf16.msra.mxu1 %v1944_v50 }
 0x433   :  { %909 = vmatprep.subr.bf16.mxu0 %v1946_v53  ;;  %950 = vmatprep.subr.bf16.mxu1 %v1948_v54 }
 0x436   :  { %910 = vmatpush1.bf16.msra.mxu0 %v1953_v57  ;;  %951 = vmatpush1.bf16.msra.mxu1 %v1956_v58 }
 0x437   :  { %911 = vmatprep.subr.bf16.mxu0 %v1958_v61  ;;  %952 = vmatprep.subr.bf16.mxu1 %v1960_v62 }
 0x43a   :  { %912 = vmatpush1.bf16.msra.mxu0 %v1965_v1  ;;  %953 = vmatpush1.bf16.msra.mxu1 %v1968_v2 }
 0x43b   :  { %913 = vmatprep.subr.bf16.mxu0 %v1970_v5  ;;  %954 = vmatprep.subr.bf16.mxu1 %v1972_v7 }
 0x43e   :  { %914 = vmatpush1.bf16.msra.mxu0 %v1977_v10  ;;  %955 = vmatpush1.bf16.msra.mxu1 %v1980_v11 }
 0x43f   :  { %915 = vmatprep.subr.bf16.mxu0 %v1982_v14  ;;  %956 = vmatprep.subr.bf16.mxu1 %v1984_v15 }
 0x442   :  { %916 = vmatpush1.bf16.msra.mxu0 %v1989_v18  ;;  %957 = vmatpush1.bf16.msra.mxu1 %v1992_v19 }
 0x443   :  { %917 = vmatprep.subr.bf16.mxu0 %v1994_v26  ;;  %958 = vmatprep.subr.bf16.mxu1 %v1996_v29 }
 0x446   :  { %918 = vmatpush1.bf16.msra.mxu0 %v2001_v6  ;;  %959 = vmatpush1.bf16.msra.mxu1 %v2004_v34 }
 0x447   :  { %1012 = vmatprep.subr.bf16.mxu0 %v1912_v37  ;;  %1053 = vmatprep.subr.bf16.mxu1 %v1916_v22 }
 0x4fc   :  { %v828_v56 = vpop.f32.mrb[28].mxu0  ;;  %v869_v20 = vpop.f32.mrb[28].mxu1 }
 0x4fd   :  { %v876_v30 = vadd.f32 %v828_v56, %v1860_v51  ;;  %v830_v27 = vpop.f32.mrb[29].mxu0  ;;  %v871_v33 = vpop.f32.mrb[29].mxu1  ;;  %v878_v28 = vadd.f32 %v869_v20, %v2340_v43 }
 0x4fe   :  { %v877_v4 = vadd.f32 %v830_v27, %v2338_v31  ;;  %v832_v12 = vpop.f32.mrb[30].mxu0  ;;  %v873_v8 = vpop.f32.mrb[30].mxu1  ;;  %v879_v3 = vadd.f32 %v871_v33, %v2339_v39  ;;  %v2341_v31 = vld [vmem:[#allocation20_spill] sm:$0xff] }
 0x4ff   :  { %v880_v32 = vmul.f32 0.5, %v876_v30  ;;  %v833_v35 = vpop.f32.mrb[31].mxu0  ;;  %v874_v60 = vpop.f32.mrb[31].mxu1  ;;  %v882_v63 = vmul.f32 0.5, %v878_v28 }
 0x500   :  { %v881_v0 = vmul.f32 0.5, %v877_v4 }
 0x501   :  { %1610 = vtanh.f32 %v880_v32  ;;  %v2342_v32 = vld [vmem:[#allocation22_spill] sm:$0xff] }
 0x502   :  { %1612 = vtanh.f32 %v881_v0 }
 0x503   :  { %1614 = vtanh.f32 %v879_v3 }
 0x504   :  { %1616 = vtanh.f32 %v882_v63  ;;  %v2343_v63 = vld [vmem:[#allocation23_spill] sm:$0xff] }
 0x50b   :  { %v1611_v47 = vpop.eup %1610 }
 0x50c   :  { %v886_v51 = vmul.f32 0.5, %v1611_v47  ;;  %v1613_v52 = vpop.eup %1612 }
 0x50d   :  { %v887_v59 = vmul.f32 0.5, %v1613_v52  ;;  %v1615_v9 = vpop.eup %1614 }
 0x50e   :  { %v889_v40 = vadd.f32 0.5, %v886_v51  ;;  %v1617_v13 = vpop.eup %1616  ;;  %v2344_v51 = vld [vmem:[#allocation21_spill] sm:$0xff] }
 0x50f   :  { %v890_v48 = vadd.f32 0.5, %v887_v59  ;;  %v888_v17 = vmul.f32 0.5, %v1617_v13 }
 0x510   :  { %v894_v55 = vmul.f32 %v1615_v9, %v889_v40 }
 0x511   :  { %v893_v16 = vmul.f32 %v890_v48, %v2134_v36  ;;  %v891_v56 = vadd.f32 0.5, %v888_v17 }
 0x513   :  { %v2176_v44 = vadd.f32 %v894_v55, %v893_v16 }
 0x515   :  { %1618 = vtanh.f32 %v2176_v44 }
 0x51f   :  { %v1619_v20 = vpop.eup %1618 }
 0x520   :  { %v897_v30 = vmul.f32 %v1619_v20, %v891_v56 }
 0x522   :  { %v902_v27 = vpack.c.bf16 %v897_v30, %v897_v30 }
 0x524   :  { %936 = vmatmul.mubr.bf16.vlgmr.msra.gmra.mrb[32].mxu0 %v902_v27  ;;  %977 = vmatmul.mubr.bf16.vlgmr.msra.gmra.mrb[32].mxu1 %v902_v27 }
 0x525   :  { %1013 = vmatpush1.bf16.msra.mxu0 %v1914_v21  ;;  %1054 = vmatpush1.bf16.msra.mxu1 %v1922_v24 }
 0x526   :  { %1014 = vmatprep.subr.bf16.mxu0 %v1920_v23  ;;  %1055 = vmatprep.subr.bf16.mxu1 %v1926_v38 }
 0x527   :  { %1044 = vmatprep.mubr.bf16.mxu0 %v2337_v25  ;;  %1085 = vmatprep.mubr.bf16.mxu1 %v2337_v25 }
 0x529   :  { %1015 = vmatpush1.bf16.msra.mxu0 %v1929_v41  ;;  %1056 = vmatpush1.bf16.msra.mxu1 %v1932_v42 }
 0x52a   :  { %1016 = vmatprep.subr.bf16.mxu0 %v1934_v45  ;;  %1057 = vmatprep.subr.bf16.mxu1 %v1936_v46 }
 0x52d   :  { %1017 = vmatpush1.bf16.msra.mxu0 %v1941_v49  ;;  %1058 = vmatpush1.bf16.msra.mxu1 %v1944_v50 }
 0x52e   :  { %1018 = vmatprep.subr.bf16.mxu0 %v1946_v53  ;;  %1059 = vmatprep.subr.bf16.mxu1 %v1948_v54 }
 0x531   :  { %1019 = vmatpush1.bf16.msra.mxu0 %v1953_v57  ;;  %1060 = vmatpush1.bf16.msra.mxu1 %v1956_v58 }
 0x532   :  { %1020 = vmatprep.subr.bf16.mxu0 %v1958_v61  ;;  %1061 = vmatprep.subr.bf16.mxu1 %v1960_v62 }
 0x535   :  { %1021 = vmatpush1.bf16.msra.mxu0 %v1965_v1  ;;  %1062 = vmatpush1.bf16.msra.mxu1 %v1968_v2 }
 0x536   :  { %1022 = vmatprep.subr.bf16.mxu0 %v1970_v5  ;;  %1063 = vmatprep.subr.bf16.mxu1 %v1972_v7 }
 0x539   :  { %1023 = vmatpush1.bf16.msra.mxu0 %v1977_v10  ;;  %1064 = vmatpush1.bf16.msra.mxu1 %v1980_v11 }
 0x53a   :  { %1024 = vmatprep.subr.bf16.mxu0 %v1982_v14  ;;  %1065 = vmatprep.subr.bf16.mxu1 %v1984_v15 }
 0x53d   :  { %1025 = vmatpush1.bf16.msra.mxu0 %v1989_v18  ;;  %1066 = vmatpush1.bf16.msra.mxu1 %v1992_v19 }
 0x53e   :  { %1026 = vmatprep.subr.bf16.mxu0 %v1994_v26  ;;  %1067 = vmatprep.subr.bf16.mxu1 %v1996_v29 }
 0x541   :  { %1027 = vmatpush1.bf16.msra.mxu0 %v2001_v6  ;;  %1068 = vmatpush1.bf16.msra.mxu1 %v2004_v34 }
 0x542   :  { %1121 = vmatprep.subr.bf16.mxu0 %v1912_v37  ;;  %1162 = vmatprep.subr.bf16.mxu1 %v1916_v22 }
 0x5f7   :  { %v937_v36 = vpop.f32.mrb[32].mxu0  ;;  %v978_v33 = vpop.f32.mrb[32].mxu1 }
 0x5f8   :  { %v985_v4 = vadd.f32 %v937_v36, %v2341_v31  ;;  %v939_v12 = vpop.f32.mrb[33].mxu0  ;;  %v980_v8 = vpop.f32.mrb[33].mxu1  ;;  %v987_v52 = vadd.f32 %v978_v33, %v2344_v51 }
 0x5f9   :  { %v986_v35 = vadd.f32 %v939_v12, %v2342_v32  ;;  %v941_v60 = vpop.f32.mrb[34].mxu0  ;;  %v982_v0 = vpop.f32.mrb[34].mxu1  ;;  %v988_v47 = vadd.f32 %v980_v8, %v2343_v63  ;;  %v2345_v32 = vld [vmem:[#allocation24_spill] sm:$0xff] }
 0x5fa   :  { %v989_v39 = vmul.f32 0.5, %v985_v4  ;;  %v942_v3 = vpop.f32.mrb[35].mxu0  ;;  %v983_v43 = vpop.f32.mrb[35].mxu1  ;;  %v991_v40 = vmul.f32 0.5, %v987_v52 }
 0x5fb   :  { %v990_v28 = vmul.f32 0.5, %v986_v35 }
 0x5fc   :  { %1620 = vtanh.f32 %v989_v39  ;;  %v2346_v39 = vld [vmem:[#allocation26_spill] sm:$0xff] }
 0x5fd   :  { %1622 = vtanh.f32 %v990_v28 }
 0x5fe   :  { %1624 = vtanh.f32 %v988_v47 }
 0x5ff   :  { %1626 = vtanh.f32 %v991_v40  ;;  %v2347_v40 = vld [vmem:[#allocation27_spill] sm:$0xff] }
 0x606   :  { %v1621_v59 = vpop.eup %1620 }
 0x607   :  { %v995_v9 = vmul.f32 0.5, %v1621_v59  ;;  %v1623_v48 = vpop.eup %1622 }
 0x608   :  { %v996_v16 = vmul.f32 0.5, %v1623_v48  ;;  %v1625_v13 = vpop.eup %1624 }
 0x609   :  { %v998_v55 = vadd.f32 0.5, %v995_v9  ;;  %v1627_v27 = vpop.eup %1626 }
 0x60a   :  { %v999_v17 = vadd.f32 0.5, %v996_v16  ;;  %v997_v36 = vmul.f32 0.5, %v1627_v27 }
 0x60b   :  { %v1003_v56 = vmul.f32 %v1625_v13, %v998_v55 }
 0x60c   :  { %v1002_v20 = vmul.f32 %v999_v17, %v2176_v44  ;;  %v1000_v31 = vadd.f32 0.5, %v997_v36 }
 0x60e   :  { %v2218_v30 = vadd.f32 %v1003_v56, %v1002_v20 }
 0x610   :  { %1628 = vtanh.f32 %v2218_v30 }
 0x61a   :  { %v1629_v33 = vpop.eup %1628 }
 0x61b   :  { %v1006_v4 = vmul.f32 %v1629_v33, %v1000_v31 }
 0x61d   :  { %v1011_v12 = vpack.c.bf16 %v1006_v4, %v1006_v4 }
 0x61f   :  { %1045 = vmatmul.mubr.bf16.vlgmr.msra.gmra.mrb[36].mxu0 %v1011_v12  ;;  %1086 = vmatmul.mubr.bf16.vlgmr.msra.gmra.mrb[36].mxu1 %v1011_v12 }
 0x620   :  { %1122 = vmatpush1.bf16.msra.mxu0 %v1914_v21  ;;  %1163 = vmatpush1.bf16.msra.mxu1 %v1922_v24 }
 0x621   :  { %1123 = vmatprep.subr.bf16.mxu0 %v1920_v23  ;;  %1164 = vmatprep.subr.bf16.mxu1 %v1926_v38 }
 0x622   :  { %1153 = vmatprep.mubr.bf16.mxu0 %v2337_v25  ;;  %1194 = vmatprep.mubr.bf16.mxu1 %v2337_v25 }
 0x624   :  { %1124 = vmatpush1.bf16.msra.mxu0 %v1929_v41  ;;  %1165 = vmatpush1.bf16.msra.mxu1 %v1932_v42 }
 0x625   :  { %1125 = vmatprep.subr.bf16.mxu0 %v1934_v45  ;;  %1166 = vmatprep.subr.bf16.mxu1 %v1936_v46 }
 0x628   :  { %1126 = vmatpush1.bf16.msra.mxu0 %v1941_v49  ;;  %1167 = vmatpush1.bf16.msra.mxu1 %v1944_v50 }
 0x629   :  { %1127 = vmatprep.subr.bf16.mxu0 %v1946_v53  ;;  %1168 = vmatprep.subr.bf16.mxu1 %v1948_v54 }
 0x62c   :  { %1128 = vmatpush1.bf16.msra.mxu0 %v1953_v57  ;;  %1169 = vmatpush1.bf16.msra.mxu1 %v1956_v58 }
 0x62d   :  { %1129 = vmatprep.subr.bf16.mxu0 %v1958_v61  ;;  %1170 = vmatprep.subr.bf16.mxu1 %v1960_v62 }
 0x630   :  { %1130 = vmatpush1.bf16.msra.mxu0 %v1965_v1  ;;  %1171 = vmatpush1.bf16.msra.mxu1 %v1968_v2 }
 0x631   :  { %1131 = vmatprep.subr.bf16.mxu0 %v1970_v5  ;;  %1172 = vmatprep.subr.bf16.mxu1 %v1972_v7 }
 0x634   :  { %1132 = vmatpush1.bf16.msra.mxu0 %v1977_v10  ;;  %1173 = vmatpush1.bf16.msra.mxu1 %v1980_v11 }
 0x635   :  { %1133 = vmatprep.subr.bf16.mxu0 %v1982_v14  ;;  %1174 = vmatprep.subr.bf16.mxu1 %v1984_v15 }
 0x638   :  { %1134 = vmatpush1.bf16.msra.mxu0 %v1989_v18  ;;  %1175 = vmatpush1.bf16.msra.mxu1 %v1992_v19 }
 0x639   :  { %1135 = vmatprep.subr.bf16.mxu0 %v1994_v26  ;;  %1176 = vmatprep.subr.bf16.mxu1 %v1996_v29 }
 0x63c   :  { %1136 = vmatpush1.bf16.msra.mxu0 %v2001_v6  ;;  %1177 = vmatpush1.bf16.msra.mxu1 %v2004_v34 }
 0x63d   :  { %1230 = vmatprep.subr.bf16.mxu0 %v1912_v37  ;;  %1271 = vmatprep.subr.bf16.mxu1 %v1916_v22  ;;  %v2348_v37 = vld [vmem:[#allocation25_spill] sm:$0xff] }
 0x6f2   :  { %v1046_v44 = vpop.f32.mrb[36].mxu0  ;;  %v1087_v8 = vpop.f32.mrb[36].mxu1 }
 0x6f3   :  { %v1094_v35 = vadd.f32 %v1046_v44, %v2345_v32  ;;  %v1048_v60 = vpop.f32.mrb[37].mxu0  ;;  %v1089_v0 = vpop.f32.mrb[37].mxu1  ;;  %v1096_v22 = vadd.f32 %v1087_v8, %v2348_v37 }
 0x6f4   :  { %v1095_v3 = vadd.f32 %v1048_v60, %v2346_v39  ;;  %v1050_v43 = vpop.f32.mrb[38].mxu0  ;;  %v1091_v28 = vpop.f32.mrb[38].mxu1  ;;  %v1097_v59 = vadd.f32 %v1089_v0, %v2347_v40 }
 0x6f5   :  { %v1098_v63 = vmul.f32 0.5, %v1094_v35  ;;  %v1051_v47 = vpop.f32.mrb[39].mxu0  ;;  %v1092_v51 = vpop.f32.mrb[39].mxu1  ;;  %v1100_v9 = vmul.f32 0.5, %v1096_v22  ;;  %v2353_v43 = vld [vmem:[#allocation32_spill] sm:$0xff] }
 0x6f6   :  { %v1099_v52 = vmul.f32 0.5, %v1095_v3  ;;  %v2354_v51 = vld [vmem:[#allocation34_spill] sm:$0xff] }
 0x6f7   :  { %1630 = vtanh.f32 %v1098_v63 }
 0x6f8   :  { %1632 = vtanh.f32 %v1099_v52 }
 0x6f9   :  { %1634 = vtanh.f32 %v1097_v59 }
 0x6fa   :  { %1636 = vtanh.f32 %v1100_v9 }
 0x701   :  { %v1631_v48 = vpop.eup %1630 }
 0x702   :  { %v1104_v55 = vmul.f32 0.5, %v1631_v48  ;;  %v1633_v16 = vpop.eup %1632 }
 0x703   :  { %v1105_v17 = vmul.f32 0.5, %v1633_v16  ;;  %v1635_v56 = vpop.eup %1634 }
 0x704   :  { %v1107_v13 = vadd.f32 0.5, %v1104_v55  ;;  %v1637_v33 = vpop.eup %1636  ;;  %v2355_v55 = vld [vmem:[#allocation35_spill] sm:$0xff] }
 0x705   :  { %v1108_v20 = vadd.f32 0.5, %v1105_v17  ;;  %v1106_v4 = vmul.f32 0.5, %v1637_v33 }
 0x706   :  { %v1112_v27 = vmul.f32 %v1635_v56, %v1107_v13  ;;  %v2356_v13 = vld [vmem:[#allocation33_spill] sm:$0xff] }
 0x707   :  { %v1111_v36 = vmul.f32 %v1108_v20, %v2218_v30  ;;  %v1109_v12 = vadd.f32 0.5, %v1106_v4 }
 0x709   :  { %v2260_v31 = vadd.f32 %v1112_v27, %v1111_v36 }
 0x70b   :  { %1638 = vtanh.f32 %v2260_v31 }
 0x715   :  { %v1639_v44 = vpop.eup %1638 }
 0x716   :  { %v1115_v8 = vmul.f32 %v1639_v44, %v1109_v12 }
 0x718   :  { %v1120_v32 = vpack.c.bf16 %v1115_v8, %v1115_v8 }
 0x71a   :  { %1154 = vmatmul.mubr.bf16.vlgmr.msra.gmra.mrb[40].mxu0 %v1120_v32  ;;  %1195 = vmatmul.mubr.bf16.vlgmr.msra.gmra.mrb[40].mxu1 %v1120_v32 }
 0x71b   :  { %1231 = vmatpush1.bf16.msra.mxu0 %v1914_v21  ;;  %1272 = vmatpush1.bf16.msra.mxu1 %v1922_v24 }
 0x71c   :  { %1232 = vmatprep.subr.bf16.mxu0 %v1920_v23  ;;  %1273 = vmatprep.subr.bf16.mxu1 %v1926_v38  ;;  %v2349_v23 = vld [vmem:[#allocation28_spill] sm:$0xff] }
 0x71d   :  { %1262 = vmatprep.mubr.bf16.mxu0 %v2337_v25  ;;  %1303 = vmatprep.mubr.bf16.mxu1 %v2337_v25 }
 0x71f   :  { %1233 = vmatpush1.bf16.msra.mxu0 %v1929_v41  ;;  %1274 = vmatpush1.bf16.msra.mxu1 %v1932_v42  ;;  %v2350_v42 = vld [vmem:[#allocation30_spill] sm:$0xff] }
 0x720   :  { %1234 = vmatprep.subr.bf16.mxu0 %v1934_v45  ;;  %1275 = vmatprep.subr.bf16.mxu1 %v1936_v46 }
 0x723   :  { %1235 = vmatpush1.bf16.msra.mxu0 %v1941_v49  ;;  %1276 = vmatpush1.bf16.msra.mxu1 %v1944_v50 }
 0x724   :  { %1236 = vmatprep.subr.bf16.mxu0 %v1946_v53  ;;  %1277 = vmatprep.subr.bf16.mxu1 %v1948_v54 }
 0x727   :  { %1237 = vmatpush1.bf16.msra.mxu0 %v1953_v57  ;;  %1278 = vmatpush1.bf16.msra.mxu1 %v1956_v58  ;;  %v2351_v58 = vld [vmem:[#allocation31_spill] sm:$0xff] }
 0x728   :  { %1238 = vmatprep.subr.bf16.mxu0 %v1958_v61  ;;  %1279 = vmatprep.subr.bf16.mxu1 %v1960_v62 }
 0x72b   :  { %1239 = vmatpush1.bf16.msra.mxu0 %v1965_v1  ;;  %1280 = vmatpush1.bf16.msra.mxu1 %v1968_v2 }
 0x72c   :  { %1240 = vmatprep.subr.bf16.mxu0 %v1970_v5  ;;  %1281 = vmatprep.subr.bf16.mxu1 %v1972_v7 }
 0x72f   :  { %1241 = vmatpush1.bf16.msra.mxu0 %v1977_v10  ;;  %1282 = vmatpush1.bf16.msra.mxu1 %v1980_v11 }
 0x730   :  { %1242 = vmatprep.subr.bf16.mxu0 %v1982_v14  ;;  %1283 = vmatprep.subr.bf16.mxu1 %v1984_v15 }
 0x733   :  { %1243 = vmatpush1.bf16.msra.mxu0 %v1989_v18  ;;  %1284 = vmatpush1.bf16.msra.mxu1 %v1992_v19 }
 0x734   :  { %1244 = vmatprep.subr.bf16.mxu0 %v1994_v26  ;;  %1285 = vmatprep.subr.bf16.mxu1 %v1996_v29 }
 0x737   :  { %1245 = vmatpush1.bf16.msra.mxu0 %v2001_v6  ;;  %1286 = vmatpush1.bf16.msra.mxu1 %v2004_v34  ;;  %v2352_v6 = vld [vmem:[#allocation29_spill] sm:$0xff] }
 0x7ed   :  { %v1155_v25 = vpop.f32.mrb[40].mxu0  ;;  %v1196_v21 = vpop.f32.mrb[40].mxu1 }
 0x7ee   :  { %v1203_v24 = vadd.f32 %v1155_v25, %v2349_v23  ;;  %v1157_v38 = vpop.f32.mrb[41].mxu0  ;;  %v1198_v41 = vpop.f32.mrb[41].mxu1  ;;  %v1205_v34 = vadd.f32 %v1196_v21, %v2352_v6 }
 0x7ef   :  { %v1204_v45 = vadd.f32 %v1157_v38, %v2350_v42  ;;  %v1159_v46 = vpop.f32.mrb[42].mxu0  ;;  %v1200_v49 = vpop.f32.mrb[42].mxu1  ;;  %v1206_v61 = vadd.f32 %v1198_v41, %v2351_v58 }
 0x7f0   :  { %v1207_v50 = vmul.f32 0.5, %v1203_v24  ;;  %v1160_v53 = vpop.f32.mrb[43].mxu0  ;;  %v1201_v54 = vpop.f32.mrb[43].mxu1  ;;  %v1209_v62 = vmul.f32 0.5, %v1205_v34 }
 0x7f1   :  { %v1208_v57 = vmul.f32 0.5, %v1204_v45 }
 0x7f2   :  { %1640 = vtanh.f32 %v1207_v50 }
 0x7f3   :  { %1642 = vtanh.f32 %v1208_v57 }
 0x7f4   :  { %1644 = vtanh.f32 %v1206_v61 }
 0x7f5   :  { %1646 = vtanh.f32 %v1209_v62 }
 0x7fc   :  { %v1641_v1 = vpop.eup %1640 }
 0x7fd   :  { %v1213_v2 = vmul.f32 0.5, %v1641_v1  ;;  %v1643_v5 = vpop.eup %1642 }
 0x7fe   :  { %v1214_v10 = vmul.f32 0.5, %v1643_v5  ;;  %v1645_v11 = vpop.eup %1644 }
 0x7ff   :  { %v1216_v7 = vadd.f32 0.5, %v1213_v2  ;;  %v1647_v26 = vpop.eup %1646 }
 0x800   :  { %v1217_v14 = vadd.f32 0.5, %v1214_v10  ;;  %v1215_v29 = vmul.f32 0.5, %v1647_v26 }
 0x801   :  { %v1221_v15 = vmul.f32 %v1645_v11, %v1216_v7 }
 0x802   :  { %v1220_v18 = vmul.f32 %v1217_v14, %v2260_v31  ;;  %v1218_v30 = vadd.f32 0.5, %v1215_v29 }
 0x804   :  { %v1222_v19 = vadd.f32 %v1221_v15, %v1220_v18 }
 0x806   :  { %1648 = vtanh.f32 %v1222_v19 }
 0x810   :  { %v1649_v35 = vpop.eup %1648 }
 0x811   :  { %v1224_v60 = vmul.f32 %v1649_v35, %v1218_v30 }
 0x813   :  { %v1229_v0 = vpack.c.bf16 %v1224_v60, %v1224_v60 }
 0x815   :  { %1263 = vmatmul.mubr.bf16.vlgmr.msra.gmra.mrb[44].mxu0 %v1229_v0  ;;  %1304 = vmatmul.mubr.bf16.vlgmr.msra.gmra.mrb[44].mxu1 %v1229_v0 }
 0x8e8   :  { %v1264_v39 = vpop.f32.mrb[44].mxu0  ;;  %v1305_v3 = vpop.f32.mrb[44].mxu1 }
 0x8e9   :  { %v1312_v28 = vadd.f32 %v1264_v39, %v2353_v43  ;;  %v1266_v63 = vpop.f32.mrb[45].mxu0  ;;  %v1307_v47 = vpop.f32.mrb[45].mxu1  ;;  %v1314_v17 = vadd.f32 %v1305_v3, %v2356_v13 }
 0x8ea   :  { %v1313_v52 = vadd.f32 %v1266_v63, %v2354_v51  ;;  %v1268_v40 = vpop.f32.mrb[46].mxu0  ;;  %v1309_v59 = vpop.f32.mrb[46].mxu1  ;;  %v1315_v16 = vadd.f32 %v1307_v47, %v2355_v55 }
 0x8eb   :  { %v1316_v37 = vmul.f32 0.5, %v1312_v28  ;;  %v1269_v22 = vpop.f32.mrb[47].mxu0  ;;  %v1310_v9 = vpop.f32.mrb[47].mxu1  ;;  %v1318_v56 = vmul.f32 0.5, %v1314_v17 }
 0x8ec   :  { %v1317_v48 = vmul.f32 0.5, %v1313_v52 }
 0x8ed   :  { %1650 = vtanh.f32 %v1316_v37 }
 0x8ee   :  { %1652 = vtanh.f32 %v1317_v48 }
 0x8ef   :  { %1654 = vtanh.f32 %v1315_v16 }
 0x8f0   :  { %1656 = vtanh.f32 %v1318_v56 }
 0x8f7   :  { %v1651_v20 = vpop.eup %1650 }
 0x8f8   :  { %v1322_v27 = vmul.f32 0.5, %v1651_v20  ;;  %v1653_v36 = vpop.eup %1652 }
 0x8f9   :  { %v1323_v33 = vmul.f32 0.5, %v1653_v36  ;;  %v1655_v4 = vpop.eup %1654 }
 0x8fa   :  { %v1325_v31 = vadd.f32 0.5, %v1322_v27  ;;  %v1657_v25 = vpop.eup %1656 }
 0x8fb   :  { %v1326_v12 = vadd.f32 0.5, %v1323_v33  ;;  %v1324_v21 = vmul.f32 0.5, %v1657_v25 }
 0x8fc   :  { %v1330_v44 = vmul.f32 %v1655_v4, %v1325_v31 }
 0x8fd   :  { %v1329_v8 = vmul.f32 %v1326_v12, %v1222_v19  ;;  %v1327_v23 = vadd.f32 0.5, %v1324_v21 }
 0x8ff   :  { %v1331_v32 = vadd.f32 %v1330_v44, %v1329_v8 }
 0x901   :  { %1658 = vtanh.f32 %v1331_v32 }
 0x90b   :  { %v1659_v24 = vpop.eup %1658 }
 0x90c   :  { %v1333_v38 = vmul.f32 %v1659_v24, %v1327_v23 }
 0x90d   :  { %1684 = dma.done.wait [#allocation6 + $0x1], 2048 }
 0x90e   :  { %1685 = vsyncadd [#allocation6 + $0x1], 4294965248 }
 0x90f   :  { %1686 = dma.done.wait [#allocation6 + $0x2], 16 }
 0x910   :  { %1687 = vsyncadd [#allocation6 + $0x2], 4294967280  ;;  %v1700_v41 = vmov 0.0|0.0   ;;  %vm1701_vm1 = vmmov 0   ;;  %v2357_v42 = vmov 0.0   ;;  %v1340_v45 = vld [vmem:[#allocation4] sm:$0xff] }
 0x911   :  { %1542 = vmatprep.subr.bf16.mxu0 %v1700_v41  ;;  %1539 = vmatprep.mubr.msk.f32.mxu0 %vm1701_vm1, %v2357_v42  ;;  %v1341_v46 = vld [vmem:[#allocation4 + $0x8] sm:$0xff]  ;;  %v1342_v49 = vld [vmem:[#allocation4 + $0x10] sm:$0xff]  ;;  %v1343_v53 = vld [vmem:[#allocation4 + $0x18] sm:$0xff] }
 0x912   :  { %v1543_v50 = vpack.c.bf16 %v1341_v46, %v1340_v45  ;;  %v1546_v54 = vpack.c.bf16 %v1343_v53, %v1342_v49  ;;  %v1344_v57 = vld [vmem:[#allocation4 + $0x20] sm:$0xff]  ;;  %v1345_v58 = vld [vmem:[#allocation4 + $0x28] sm:$0xff]  ;;  %v1346_v6 = vld [vmem:[#allocation4 + $0x30] sm:$0xff] }
 0x913   :  { %v1549_v61 = vpack.c.bf16 %v1345_v58, %v1344_v57  ;;  %v1347_v34 = vld [vmem:[#allocation4 + $0x38] sm:$0xff]  ;;  %v1348_v1 = vld [vmem:[#allocation4 + $0x40] sm:$0xff]  ;;  %v1349_v2 = vld [vmem:[#allocation4 + $0x48] sm:$0xff] }
 0x914   :  { %1544 = vmatpush3.bf16.msra.mxu0 %v1543_v50  ;;  %v1552_v62 = vpack.c.bf16 %v1347_v34, %v1346_v6  ;;  %v1555_v5 = vpack.c.bf16 %v1349_v2, %v1348_v1  ;;  %v1350_v7 = vld [vmem:[#allocation4 + $0x50] sm:$0xff]  ;;  %v1351_v10 = vld [vmem:[#allocation4 + $0x58] sm:$0xff]  ;;  %v1352_v14 = vld [vmem:[#allocation4 + $0x60] sm:$0xff] }
 0x915   :  { %1545 = vmatprep.subr.bf16.mxu0 %v1700_v41  ;;  %v1558_v11 = vpack.c.bf16 %v1351_v10, %v1350_v7  ;;  %v1353_v15 = vld [vmem:[#allocation4 + $0x68] sm:$0xff]  ;;  %v1354_v19 = vld [vmem:[#allocation4 + $0x70] sm:$0xff]  ;;  %v1355_v26 = vld [vmem:[#allocation4 + $0x78] sm:$0xff] }
 0x916   :  { %v1561_v18 = vpack.c.bf16 %v1353_v15, %v1352_v14  ;;  %v1564_v29 = vpack.c.bf16 %v1355_v26, %v1354_v19  ;;  %v1486_v30 = vld [vmem:[#allocation5] ss:$0 sm:$0xff] }
 0x918   :  { %1547 = vmatpush3.bf16.msra.mxu0 %v1546_v54 }
 0x919   :  { %1548 = vmatprep.subr.bf16.mxu0 %v1700_v41 }
 0x91c   :  { %1550 = vmatpush3.bf16.msra.mxu0 %v1549_v61 }
 0x91d   :  { %1551 = vmatprep.subr.bf16.mxu0 %v1700_v41 }
 0x920   :  { %1553 = vmatpush3.bf16.msra.mxu0 %v1552_v62 }
 0x921   :  { %1554 = vmatprep.subr.bf16.mxu0 %v1700_v41 }
 0x924   :  { %1556 = vmatpush3.bf16.msra.mxu0 %v1555_v5 }
 0x925   :  { %1557 = vmatprep.subr.bf16.mxu0 %v1700_v41 }
 0x928   :  { %1559 = vmatpush3.bf16.msra.mxu0 %v1558_v11 }
 0x929   :  { %1560 = vmatprep.subr.bf16.mxu0 %v1700_v41 }
 0x92c   :  { %1562 = vmatpush3.bf16.msra.mxu0 %v1561_v18 }
 0x92d   :  { %1563 = vmatprep.subr.bf16.mxu0 %v1700_v41 }
 0x930   :  { %1565 = vmatpush3.bf16.msra.mxu0 %v1564_v29 }
 0x933   :  { %1540 = vmatmul.mubr.f32.vlgmr.msra.gmra.mrb[48].mxu0 %v1333_v38 }
 0xa06   :  { %v1429_v35 = vpop.f32.mrb[48].mxu0 }
 0xa07   :  { %v1430_v60 = vadd.f32 %v1486_v30, %v1429_v35  ;;  %v1541_v0 = vpop.f32.mrb[49].mxu0 }
 0xa09   :  { %1433 = vst [vmem:[%s2314_s6] sm:$0xff] %v1430_v60 }
 0xa0a   :  { %1438 = vsyncmov [#allocation6] }
 0xa0d   :  { %s1439_s23 = vpop.sfrf %1438 }
 0xa0e   :  { %p1487_p8 = scmp.ne.s32.totalorder %s1439_s23, 0 }
 0xa10   :  { %1443 = shalt.err (%p1487_p8)  }
 0xa11   :  { %1445 = vsyncmov [#allocation6 + $0x1] }
 0xa14   :  { %s1446_s24 = vpop.sfrf %1445 }
 0xa15   :  { %p1488_p9 = scmp.ne.s32.totalorder %s1446_s24, 0 }
 0xa17   :  { %1450 = shalt.err (%p1488_p9)  }
 0xa18   :  { %1452 = vsyncmov [#allocation6 + $0x2] }
 0xa1b   :  { %s1453_s25 = vpop.sfrf %1452 }
 0xa1c   :  { %p1489_p10 = scmp.ne.s32.totalorder %s1453_s25, 0 }
 0xa1e   :  { %1457 = shalt.err (%p1489_p10)  }

</bundles_post_ra>
